<compile_context>
chip_gen: v5e
topology: v5e:2x2
jax: 0.10.0
libtpu: 0.0.40
codegen_flags: <defaults>
</compile_context>

<pallas_src>
import functools
import math

import jax
import jax.numpy as jnp
from jax import lax
from jax.experimental import pallas as pl
from jax.experimental.pallas import tpu as pltpu

# ----------------------------- config (small) -----------------------------
BATCH = 2
SEQ = 8
HIDDEN = 128
NUM_HEADS = 4
HEAD_DIM = HIDDEN // NUM_HEADS          # 32
NUM_KV_HEADS = 2
NUM_KV_GROUPS = NUM_HEADS // NUM_KV_HEADS
KV_DIM = NUM_KV_HEADS * HEAD_DIM        # 64
INTERMEDIATE = 256
RMS_EPS = 1e-6
ROPE_THETA = 10000.0
# NOTE: the PyTorch module hardcodes softmax_scale = 1/sqrt(128) regardless of
# head_dim — reproduced exactly.
SOFTMAX_SCALE = 1.0 / math.sqrt(128.0)
NEG_INF = -1e30  # finite large-negative additive mask (no NaN even if misused)


# ------------------------------ fused kernel --------------------------------
def _decoder_layer_kernel(x_ref, cosq_ref, sinq_ref, cosk_ref, sink_ref,
                          bias_ref, pq_ref, pk_ref,
                          ln1_ref, wq_ref, bq_ref, wk_ref, bk_ref,
                          wv_ref, bv_ref, wo_ref, ln2_ref,
                          wg_ref, wu_ref, wd_ref,
                          o_ref, *,
                          num_heads, num_kv_heads, head_dim, eps, scale):
    f32 = jnp.float32
    bf16 = jnp.bfloat16

    x = x_ref[...].astype(f32)                                 # (R, H) folded rows

    # ---- input RMSNorm (f32, VPU) ----
    var = jnp.mean(x * x, axis=-1, keepdims=True)
    xn = x * lax.rsqrt(var + eps) * ln1_ref[...]
    xn_b = xn.astype(bf16)

    # ---- QKV projections: bf16 MXU inputs, f32 accumulate, + bias ----
    q = jnp.dot(xn_b, wq_ref[...], preferred_element_type=f32) + bq_ref[...]   # (R, H)
    k = jnp.dot(xn_b, wk_ref[...], preferred_element_type=f32) + bk_ref[...]   # (R, KVD)
    v = jnp.dot(xn_b, wv_ref[...], preferred_element_type=f32) + bv_ref[...]   # (R, KVD)

    # ---- full-width RoPE: rotate_half via block-diag signed permutation on
    # the MXU (f32, exact), cos/sin already tiled lane-dense ----
    q_rot = q * cosq_ref[...] + jnp.dot(q, pq_ref[...],
                                        preferred_element_type=f32) * sinq_ref[...]
    k_rot = k * cosk_ref[...] + jnp.dot(k, pk_ref[...],
                                        preferred_element_type=f32) * sink_ref[...]

    # fold softmax scale into Q once (one (R,H) mul instead of per-head muls)
    q_b = (q_rot * scale).astype(bf16)
    k_b = k_rot.astype(bf16)
    v_b = v.astype(bf16)
    bias = bias_ref[...]                                       # (R, R) 0 / -1e30

    wo = wo_ref[...]                                           # (H, H) bf16

    groups = num_heads // num_kv_heads
    attn_out = jnp.zeros(x.shape, dtype=f32)                   # per-head o_proj accumulator
    for j in range(num_kv_heads):
        # K/V for this kv-head sliced once, reused by the whole query group.
        k_j = k_b[:, j * head_dim:(j + 1) * head_dim]          # (R, D)
        v_j = v_b[:, j * head_dim:(j + 1) * head_dim]          # (R, D)
        for g in range(groups):
            h = j * groups + g
            q_h = q_b[:, h * head_dim:(h + 1) * head_dim]      # (R, D)
            s = lax.dot_general(q_h, k_j,
                                dimension_numbers=(((1,), (1,)), ((), ())),
                                preferred_element_type=f32) + bias       # (R, R)
            m = jnp.max(s, axis=-1, keepdims=True)
            p = jnp.exp(s - m)
            p = p * pl.reciprocal(jnp.sum(p, axis=-1, keepdims=True), approx=True)
            ho = jnp.dot(p.astype(bf16), v_j, preferred_element_type=f32)  # (R, D)
            # lane-dense per-head o_proj accumulation (no concatenate)
            attn_out = attn_out + jnp.dot(
                ho.astype(bf16), wo[h * head_dim:(h + 1) * head_dim, :],
                preferred_element_type=f32)                    # (R, H)

    # ---- residual ----
    h1 = x + attn_out

    # ---- post-attention RMSNorm + SwiGLU MLP + residual ----
    var2 = jnp.mean(h1 * h1, axis=-1, keepdims=True)
    hn2 = (h1 * lax.rsqrt(var2 + eps) * ln2_ref[...]).astype(bf16)
    gate = jnp.dot(hn2, wg_ref[...], preferred_element_type=f32)
    up = jnp.dot(hn2, wu_ref[...], preferred_element_type=f32)
    act = (gate * jax.nn.sigmoid(gate) * up).astype(bf16)
    out = h1 + jnp.dot(act, wd_ref[...], preferred_element_type=f32)

    o_ref[...] = out.astype(o_ref.dtype)


# ------------------------------- wrapper ------------------------------------
def qwen2_decoder_layer(hidden_states, params, cos, sin):
    """Prefill-path forward of Qwen2DecoderLayer.

    hidden_states: (B, S, H) f32;  cos/sin: (S, head_dim) f32.
    """
    B, S, H = hidden_states.shape
    R = B * S
    D = HEAD_DIM
    bf16 = jnp.bfloat16

    x2 = hidden_states.reshape(R, H)

    # RoPE tables: lane-dense per-head tiling, tiled over folded batch rows.
    cos_q = jnp.tile(cos, (B, NUM_HEADS))           # (R, H)
    sin_q = jnp.tile(sin, (B, NUM_HEADS))
    cos_k = jnp.tile(cos, (B, NUM_KV_HEADS))        # (R, KV_DIM)
    sin_k = jnp.tile(sin, (B, NUM_KV_HEADS))

    # Block-diagonal causal additive bias over the folded (R, R) score matrix.
    idx = jnp.arange(R)
    same_seq = (idx[:, None] // S) == (idx[None, :] // S)
    causal = (idx[None, :] % S) <= (idx[:, None] % S)
    bias = jnp.where(same_seq & causal, 0.0, NEG_INF).astype(jnp.float32)

    # rotate_half as a constant block-diagonal signed permutation (exact, MXU).
    half = D // 2
    eye = jnp.eye(half, dtype=jnp.float32)
    zeros = jnp.zeros((half, half), jnp.float32)
    p_block = jnp.block([[zeros, eye], [-eye, zeros]])          # (D, D)
    p_q = jnp.kron(jnp.eye(NUM_HEADS, dtype=jnp.float32), p_block)      # (H, H)
    p_k = jnp.kron(jnp.eye(NUM_KV_HEADS, dtype=jnp.float32), p_block)   # (KVD, KVD)

    kernel = functools.partial(
        _decoder_layer_kernel,
        num_heads=NUM_HEADS, num_kv_heads=NUM_KV_HEADS,
        head_dim=D, eps=RMS_EPS, scale=SOFTMAX_SCALE)

    def full(shape):
        return pl.BlockSpec(shape, lambda i, _s=shape: (0,) * len(_s))

    out2 = pl.pallas_call(
        kernel,
        out_shape=jax.ShapeDtypeStruct((R, H), hidden_states.dtype),
        grid=(1,),
        in_specs=[
            full((R, H)),                                   # x
            full((R, H)), full((R, H)),                     # cos_q, sin_q
            full((R, KV_DIM)), full((R, KV_DIM)),           # cos_k, sin_k
            full((R, R)),                                   # mask bias
            full((H, H)), full((KV_DIM, KV_DIM)),           # p_q, p_k
            full((1, H)),                                   # ln1_w
            full((H, H)), full((1, H)),                     # wq, bq
            full((H, KV_DIM)), full((1, KV_DIM)),           # wk, bk
            full((H, KV_DIM)), full((1, KV_DIM)),           # wv, bv
            full((H, H)),                                   # wo
            full((1, H)),                                   # ln2_w
            full((H, INTERMEDIATE)), full((H, INTERMEDIATE)),  # w_gate, w_up
            full((INTERMEDIATE, H)),                        # w_down
        ],
        out_specs=full((R, H)),
        compiler_params=pltpu.CompilerParams(
            dimension_semantics=("arbitrary",)),
    )(x2, cos_q, sin_q, cos_k, sin_k, bias, p_q, p_k,
      params["ln1_w"].reshape(1, H),
      params["wq"].astype(bf16), params["bq"].reshape(1, H),
      params["wk"].astype(bf16), params["bk"].reshape(1, KV_DIM),
      params["wv"].astype(bf16), params["bv"].reshape(1, KV_DIM),
      params["wo"].astype(bf16),
      params["ln2_w"].reshape(1, H),
      params["w_gate"].astype(bf16), params["w_up"].astype(bf16),
      params["w_down"].astype(bf16))

    return out2.reshape(B, S, H)


# ------------------------------- JAX glue ----------------------------------
def rotate_half(x):
    x1, x2 = jnp.split(x, 2, axis=-1)
    return jnp.concatenate([-x2, x1], axis=-1)


def rotary_embedding(seq, dim, theta):
    inv_freq = 1.0 / (theta ** (jnp.arange(0, dim, 2, dtype=jnp.float32) / dim))
    pos = jnp.arange(seq, dtype=jnp.float32)
    freqs = pos[:, None] * inv_freq[None, :]                  # (S, D/2)
    emb = jnp.concatenate([freqs, freqs], axis=-1)            # (S, D)
    return jnp.cos(emb), jnp.sin(emb)


# ------------------------- pure-JAX reference (check) -----------------------
def reference_layer(hidden_states, params, cos, sin):
    B, S, H = hidden_states.shape
    x = hidden_states.astype(jnp.float32)

    def rms(t, w):
        var = jnp.mean(t * t, axis=-1, keepdims=True)
        return t * lax.rsqrt(var + RMS_EPS) * w

    hn = rms(x, params["ln1_w"])
    q = hn @ params["wq"] + params["bq"]
    k = hn @ params["wk"] + params["bk"]
    v = hn @ params["wv"] + params["bv"]
    q = q.reshape(B, S, NUM_HEADS, HEAD_DIM).transpose(0, 2, 1, 3)
    k = k.reshape(B, S, NUM_KV_HEADS, HEAD_DIM).transpose(0, 2, 1, 3)
    v = v.reshape(B, S, NUM_KV_HEADS, HEAD_DIM).transpose(0, 2, 1, 3)
    c = cos[None, None]
    s = sin[None, None]
    q = q * c + rotate_half(q) * s
    k = k * c + rotate_half(k) * s
    k = jnp.repeat(k, NUM_KV_GROUPS, axis=1)
    v = jnp.repeat(v, NUM_KV_GROUPS, axis=1)
    scores = jnp.einsum("bhqd,bhkd->bhqk", q, k) * SOFTMAX_SCALE
    mask = jnp.triu(jnp.ones((S, S), dtype=bool), k=1)
    scores = jnp.where(mask[None, None], -jnp.inf, scores)
    w = jax.nn.softmax(scores, axis=-1)
    attn = jnp.einsum("bhqk,bhkd->bhqd", w, v)
    attn = attn.transpose(0, 2, 1, 3).reshape(B, S, H) @ params["wo"]
    h1 = x + attn
    hn2 = rms(h1, params["ln2_w"])
    g = hn2 @ params["w_gate"]
    u = hn2 @ params["w_up"]
    m = (jax.nn.silu(g) * u) @ params["w_down"]
    return h1 + m


# --------------------------------- main -------------------------------------
def init_params(key):
    ks = jax.random.split(key, 8)
    scale = 0.02
    return {
        "ln1_w": jnp.ones((HIDDEN,), jnp.float32),
        "ln2_w": jnp.ones((HIDDEN,), jnp.float32),
        "wq": scale * jax.random.normal(ks[0], (HIDDEN, HIDDEN), jnp.float32),
        "bq": scale * jax.random.normal(ks[1], (HIDDEN,), jnp.float32),
        "wk": scale * jax.random.normal(ks[2], (HIDDEN, KV_DIM), jnp.float32),
        "bk": scale * jax.random.normal(ks[3], (KV_DIM,), jnp.float32),
        "wv": scale * jax.random.normal(ks[4], (HIDDEN, KV_DIM), jnp.float32),
        "bv": scale * jax.random.normal(ks[5], (KV_DIM,), jnp.float32),
        "wo": scale * jax.random.normal(ks[6], (HIDDEN, HIDDEN), jnp.float32),
        "w_gate": scale * jax.random.normal(jax.random.fold_in(key, 10),
                                            (HIDDEN, INTERMEDIATE), jnp.float32),
        "w_up": scale * jax.random.normal(jax.random.fold_in(key, 11),
                                          (HIDDEN, INTERMEDIATE), jnp.float32),
        "w_down": scale * jax.random.normal(jax.random.fold_in(key, 12),
                                            (INTERMEDIATE, HIDDEN), jnp.float32),
    }


if __name__ == "__main__":
    key = jax.random.PRNGKey(0)
    params = init_params(key)
    x = jax.random.normal(jax.random.fold_in(key, 99),
                          (BATCH, SEQ, HIDDEN), jnp.float32)
    cos, sin = rotary_embedding(SEQ, HEAD_DIM, ROPE_THETA)

    out = qwen2_decoder_layer(x, params, cos, sin)
    out = jax.block_until_ready(out)

    ref = jax.block_until_ready(reference_layer(x, params, cos, sin))
    assert out.shape == (BATCH, SEQ, HIDDEN)
    # Tolerance widened vs the pure-f32 version: the kernel feeds the MXU bf16
    # inputs (and uses approx reciprocal in softmax) while the reference is f32.
    assert jnp.allclose(out, ref, rtol=1e-2, atol=1e-2), "mismatch vs reference"

    print("KERNEL_OK")
</pallas_src>

<mosaic_0001>
module attributes {stable_mosaic.version = 11 : i64} {
  func.func @_decoder_layer_kernel(%arg0: i32, %arg1: memref<16x128xf32, #tpu.memory_space<vmem>>, %arg2: memref<16x128xf32, #tpu.memory_space<vmem>>, %arg3: memref<16x128xf32, #tpu.memory_space<vmem>>, %arg4: memref<16x64xf32, #tpu.memory_space<vmem>>, %arg5: memref<16x64xf32, #tpu.memory_space<vmem>>, %arg6: memref<16x16xf32, #tpu.memory_space<vmem>>, %arg7: memref<128x128xf32, #tpu.memory_space<vmem>>, %arg8: memref<64x64xf32, #tpu.memory_space<vmem>>, %arg9: memref<1x128xf32, #tpu.memory_space<vmem>>, %arg10: memref<128x128xbf16, #tpu.memory_space<vmem>>, %arg11: memref<1x128xf32, #tpu.memory_space<vmem>>, %arg12: memref<128x64xbf16, #tpu.memory_space<vmem>>, %arg13: memref<1x64xf32, #tpu.memory_space<vmem>>, %arg14: memref<128x64xbf16, #tpu.memory_space<vmem>>, %arg15: memref<1x64xf32, #tpu.memory_space<vmem>>, %arg16: memref<128x128xbf16, #tpu.memory_space<vmem>>, %arg17: memref<1x128xf32, #tpu.memory_space<vmem>>, %arg18: memref<128x256xbf16, #tpu.memory_space<vmem>>, %arg19: memref<128x256xbf16, #tpu.memory_space<vmem>>, %arg20: memref<256x128xbf16, #tpu.memory_space<vmem>>, %arg21: memref<16x128xf32, #tpu.memory_space<vmem>>) attributes {dimension_semantics = [#tpu.dimension_semantics<arbitrary>], iteration_bounds = array<i64: 1>, scalar_prefetch = 0 : i64, scratch_operands = 0 : i64, tpu.core_type = #tpu.core_type<tc>, window_params = [{pipeline_mode = #tpu.pipeline_mode<synchronous>, transform_indices = @transform_0, window_bounds = array<i64: 16, 128>}, {pipeline_mode = #tpu.pipeline_mode<synchronous>, transform_indices = @transform_1, window_bounds = array<i64: 16, 128>}, {pipeline_mode = #tpu.pipeline_mode<synchronous>, transform_indices = @transform_2, window_bounds = array<i64: 16, 128>}, {pipeline_mode = #tpu.pipeline_mode<synchronous>, transform_indices = @transform_3, window_bounds = array<i64: 16, 64>}, {pipeline_mode = #tpu.pipeline_mode<synchronous>, transform_indices = @transform_4, window_bounds = array<i64: 16, 64>}, {pipeline_mode = #tpu.pipeline_mode<synchronous>, transform_indices = @transform_5, window_bounds = array<i64: 16, 16>}, {pipeline_mode = #tpu.pipeline_mode<synchronous>, transform_indices = @transform_6, window_bounds = array<i64: 128, 128>}, {pipeline_mode = #tpu.pipeline_mode<synchronous>, transform_indices = @transform_7, window_bounds = array<i64: 64, 64>}, {pipeline_mode = #tpu.pipeline_mode<synchronous>, transform_indices = @transform_8, window_bounds = array<i64: 1, 128>}, {pipeline_mode = #tpu.pipeline_mode<synchronous>, transform_indices = @transform_9, window_bounds = array<i64: 128, 128>}, {pipeline_mode = #tpu.pipeline_mode<synchronous>, transform_indices = @transform_10, window_bounds = array<i64: 1, 128>}, {pipeline_mode = #tpu.pipeline_mode<synchronous>, transform_indices = @transform_11, window_bounds = array<i64: 128, 64>}, {pipeline_mode = #tpu.pipeline_mode<synchronous>, transform_indices = @transform_12, window_bounds = array<i64: 1, 64>}, {pipeline_mode = #tpu.pipeline_mode<synchronous>, transform_indices = @transform_13, window_bounds = array<i64: 128, 64>}, {pipeline_mode = #tpu.pipeline_mode<synchronous>, transform_indices = @transform_14, window_bounds = array<i64: 1, 64>}, {pipeline_mode = #tpu.pipeline_mode<synchronous>, transform_indices = @transform_15, window_bounds = array<i64: 128, 128>}, {pipeline_mode = #tpu.pipeline_mode<synchronous>, transform_indices = @transform_16, window_bounds = array<i64: 1, 128>}, {pipeline_mode = #tpu.pipeline_mode<synchronous>, transform_indices = @transform_17, window_bounds = array<i64: 128, 256>}, {pipeline_mode = #tpu.pipeline_mode<synchronous>, transform_indices = @transform_18, window_bounds = array<i64: 128, 256>}, {pipeline_mode = #tpu.pipeline_mode<synchronous>, transform_indices = @transform_19, window_bounds = array<i64: 256, 128>}, {pipeline_mode = #tpu.pipeline_mode<synchronous>, transform_indices = @transform_20, window_bounds = array<i64: 16, 128>}]} {
    %c0 = arith.constant 0 : index
    %c0_0 = arith.constant 0 : index
    %0 = vector.load %arg1[%c0, %c0_0] : memref<16x128xf32, #tpu.memory_space<vmem>>, vector<16x128xf32>
    %1 = arith.mulf %0, %0 : vector<16x128xf32>
    %cst = arith.constant dense<0.000000e+00> : vector<16xf32>
    %2 = vector.multi_reduction <add>, %1, %cst [1] : vector<16x128xf32> to vector<16xf32>
    %3 = vector.shape_cast %2 : vector<16xf32> to vector<16x1xf32>
    %cst_1 = arith.constant 1.280000e+02 : f32
    %4 = vector.broadcast %cst_1 : f32 to vector<16x1xf32>
    %5 = arith.divf %3, %4 : vector<16x1xf32>
    %cst_2 = arith.constant 9.99999997E-7 : f32
    %6 = vector.broadcast %cst_2 : f32 to vector<16x1xf32>
    %7 = arith.addf %5, %6 : vector<16x1xf32>
    %8 = math.rsqrt %7 : vector<16x1xf32>
    %9 = vector.broadcast %8 : vector<16x1xf32> to vector<16x128xf32>
    %10 = arith.mulf %0, %9 : vector<16x128xf32>
    %c0_3 = arith.constant 0 : index
    %c0_4 = arith.constant 0 : index
    %11 = vector.load %arg9[%c0_3, %c0_4] : memref<1x128xf32, #tpu.memory_space<vmem>>, vector<1x128xf32>
    %12 = vector.broadcast %11 : vector<1x128xf32> to vector<16x128xf32>
    %13 = arith.mulf %10, %12 : vector<16x128xf32>
    %14 = arith.truncf %13 : vector<16x128xf32> to vector<16x128xbf16>
    %c0_5 = arith.constant 0 : index
    %c0_6 = arith.constant 0 : index
    %15 = vector.load %arg10[%c0_5, %c0_6] : memref<128x128xbf16, #tpu.memory_space<vmem>>, vector<128x128xbf16>
    %cst_7 = arith.constant dense<0.000000e+00> : vector<16x128xf32>
    %16 = tpu.matmul %14, %15, %cst_7 {dimension_numbers = #tpu.dot_dimension_numbers<[1], [0], [0], [1], [0, 0, 1, 1], [], []>} : vector<16x128xbf16>, vector<128x128xbf16>, vector<16x128xf32> -> vector<16x128xf32>
    %c0_8 = arith.constant 0 : index
    %c0_9 = arith.constant 0 : index
    %17 = vector.load %arg11[%c0_8, %c0_9] : memref<1x128xf32, #tpu.memory_space<vmem>>, vector<1x128xf32>
    %18 = vector.broadcast %17 : vector<1x128xf32> to vector<16x128xf32>
    %19 = arith.addf %16, %18 : vector<16x128xf32>
    %c0_10 = arith.constant 0 : index
    %c0_11 = arith.constant 0 : index
    %20 = vector.load %arg12[%c0_10, %c0_11] : memref<128x64xbf16, #tpu.memory_space<vmem>>, vector<128x64xbf16>
    %cst_12 = arith.constant dense<0.000000e+00> : vector<16x64xf32>
    %21 = tpu.matmul %14, %20, %cst_12 {dimension_numbers = #tpu.dot_dimension_numbers<[1], [0], [0], [1], [0, 0, 1, 1], [], []>} : vector<16x128xbf16>, vector<128x64xbf16>, vector<16x64xf32> -> vector<16x64xf32>
    %c0_13 = arith.constant 0 : index
    %c0_14 = arith.constant 0 : index
    %22 = vector.load %arg13[%c0_13, %c0_14] : memref<1x64xf32, #tpu.memory_space<vmem>>, vector<1x64xf32>
    %23 = vector.broadcast %22 : vector<1x64xf32> to vector<16x64xf32>
    %24 = arith.addf %21, %23 : vector<16x64xf32>
    %c0_15 = arith.constant 0 : index
    %c0_16 = arith.constant 0 : index
    %25 = vector.load %arg14[%c0_15, %c0_16] : memref<128x64xbf16, #tpu.memory_space<vmem>>, vector<128x64xbf16>
    %cst_17 = arith.constant dense<0.000000e+00> : vector<16x64xf32>
    %26 = tpu.matmul %14, %25, %cst_17 {dimension_numbers = #tpu.dot_dimension_numbers<[1], [0], [0], [1], [0, 0, 1, 1], [], []>} : vector<16x128xbf16>, vector<128x64xbf16>, vector<16x64xf32> -> vector<16x64xf32>
    %c0_18 = arith.constant 0 : index
    %c0_19 = arith.constant 0 : index
    %27 = vector.load %arg15[%c0_18, %c0_19] : memref<1x64xf32, #tpu.memory_space<vmem>>, vector<1x64xf32>
    %28 = vector.broadcast %27 : vector<1x64xf32> to vector<16x64xf32>
    %29 = arith.addf %26, %28 : vector<16x64xf32>
    %c0_20 = arith.constant 0 : index
    %c0_21 = arith.constant 0 : index
    %30 = vector.load %arg2[%c0_20, %c0_21] : memref<16x128xf32, #tpu.memory_space<vmem>>, vector<16x128xf32>
    %31 = arith.mulf %19, %30 : vector<16x128xf32>
    %c0_22 = arith.constant 0 : index
    %c0_23 = arith.constant 0 : index
    %32 = vector.load %arg7[%c0_22, %c0_23] : memref<128x128xf32, #tpu.memory_space<vmem>>, vector<128x128xf32>
    %cst_24 = arith.constant dense<0.000000e+00> : vector<16x128xf32>
    %33 = tpu.matmul %19, %32, %cst_24 {dimension_numbers = #tpu.dot_dimension_numbers<[1], [0], [0], [1], [0, 0, 1, 1], [], []>} : vector<16x128xf32>, vector<128x128xf32>, vector<16x128xf32> -> vector<16x128xf32>
    %c0_25 = arith.constant 0 : index
    %c0_26 = arith.constant 0 : index
    %34 = vector.load %arg3[%c0_25, %c0_26] : memref<16x128xf32, #tpu.memory_space<vmem>>, vector<16x128xf32>
    %35 = arith.mulf %33, %34 : vector<16x128xf32>
    %36 = arith.addf %31, %35 : vector<16x128xf32>
    %c0_27 = arith.constant 0 : index
    %c0_28 = arith.constant 0 : index
    %37 = vector.load %arg4[%c0_27, %c0_28] : memref<16x64xf32, #tpu.memory_space<vmem>>, vector<16x64xf32>
    %38 = arith.mulf %24, %37 : vector<16x64xf32>
    %c0_29 = arith.constant 0 : index
    %c0_30 = arith.constant 0 : index
    %39 = vector.load %arg8[%c0_29, %c0_30] : memref<64x64xf32, #tpu.memory_space<vmem>>, vector<64x64xf32>
    %cst_31 = arith.constant dense<0.000000e+00> : vector<16x64xf32>
    %40 = tpu.matmul %24, %39, %cst_31 {dimension_numbers = #tpu.dot_dimension_numbers<[1], [0], [0], [1], [0, 0, 1, 1], [], []>} : vector<16x64xf32>, vector<64x64xf32>, vector<16x64xf32> -> vector<16x64xf32>
    %c0_32 = arith.constant 0 : index
    %c0_33 = arith.constant 0 : index
    %41 = vector.load %arg5[%c0_32, %c0_33] : memref<16x64xf32, #tpu.memory_space<vmem>>, vector<16x64xf32>
    %42 = arith.mulf %40, %41 : vector<16x64xf32>
    %43 = arith.addf %38, %42 : vector<16x64xf32>
    %cst_34 = arith.constant 0.0883883461 : f32
    %44 = vector.broadcast %cst_34 : f32 to vector<16x128xf32>
    %45 = arith.mulf %36, %44 : vector<16x128xf32>
    %46 = arith.truncf %45 : vector<16x128xf32> to vector<16x128xbf16>
    %47 = arith.truncf %43 : vector<16x64xf32> to vector<16x64xbf16>
    %48 = arith.truncf %29 : vector<16x64xf32> to vector<16x64xbf16>
    %c0_35 = arith.constant 0 : index
    %c0_36 = arith.constant 0 : index
    %49 = vector.load %arg6[%c0_35, %c0_36] : memref<16x16xf32, #tpu.memory_space<vmem>>, vector<16x16xf32>
    %c0_37 = arith.constant 0 : index
    %c0_38 = arith.constant 0 : index
    %50 = vector.load %arg16[%c0_37, %c0_38] : memref<128x128xbf16, #tpu.memory_space<vmem>>, vector<128x128xbf16>
    %cst_39 = arith.constant 0.000000e+00 : f32
    %51 = vector.broadcast %cst_39 : f32 to vector<16x128xf32>
    %52 = vector.extract_strided_slice %47 {offsets = [0, 0], sizes = [16, 32], strides = [1, 1]} : vector<16x64xbf16> to vector<16x32xbf16>
    %53 = vector.extract_strided_slice %48 {offsets = [0, 0], sizes = [16, 32], strides = [1, 1]} : vector<16x64xbf16> to vector<16x32xbf16>
    %54 = vector.extract_strided_slice %46 {offsets = [0, 0], sizes = [16, 32], strides = [1, 1]} : vector<16x128xbf16> to vector<16x32xbf16>
    %cst_40 = arith.constant dense<0.000000e+00> : vector<16x16xf32>
    %55 = tpu.matmul %54, %52, %cst_40 {dimension_numbers = #tpu.dot_dimension_numbers<[1], [1], [0], [0], [0, 0, 1, 0], [], []>} : vector<16x32xbf16>, vector<16x32xbf16>, vector<16x16xf32> -> vector<16x16xf32>
    %56 = arith.addf %55, %49 : vector<16x16xf32>
    %cst_41 = arith.constant dense<0xFF800000> : vector<16xf32>
    %57 = vector.multi_reduction <maximumf>, %56, %cst_41 [1] : vector<16x16xf32> to vector<16xf32>
    %58 = vector.shape_cast %57 : vector<16xf32> to vector<16x1xf32>
    %59 = vector.broadcast %58 : vector<16x1xf32> to vector<16x16xf32>
    %60 = arith.subf %56, %59 : vector<16x16xf32>
    %61 = math.exp %60 : vector<16x16xf32>
    %cst_42 = arith.constant dense<0.000000e+00> : vector<16xf32>
    %62 = vector.multi_reduction <add>, %61, %cst_42 [1] : vector<16x16xf32> to vector<16xf32>
    %63 = vector.shape_cast %62 : vector<16xf32> to vector<16x1xf32>
    %64 = tpu.reciprocal %63 {approx = true} : vector<16x1xf32> -> vector<16x1xf32>
    %65 = vector.broadcast %64 : vector<16x1xf32> to vector<16x16xf32>
    %66 = arith.mulf %61, %65 : vector<16x16xf32>
    %67 = arith.truncf %66 : vector<16x16xf32> to vector<16x16xbf16>
    %cst_43 = arith.constant dense<0.000000e+00> : vector<16x32xf32>
    %68 = tpu.matmul %67, %53, %cst_43 {dimension_numbers = #tpu.dot_dimension_numbers<[1], [0], [0], [1], [0, 0, 1, 1], [], []>} : vector<16x16xbf16>, vector<16x32xbf16>, vector<16x32xf32> -> vector<16x32xf32>
    %69 = arith.truncf %68 : vector<16x32xf32> to vector<16x32xbf16>
    %70 = vector.extract_strided_slice %50 {offsets = [0, 0], sizes = [32, 128], strides = [1, 1]} : vector<128x128xbf16> to vector<32x128xbf16>
    %cst_44 = arith.constant dense<0.000000e+00> : vector<16x128xf32>
    %71 = tpu.matmul %69, %70, %cst_44 {dimension_numbers = #tpu.dot_dimension_numbers<[1], [0], [0], [1], [0, 0, 1, 1], [], []>} : vector<16x32xbf16>, vector<32x128xbf16>, vector<16x128xf32> -> vector<16x128xf32>
    %72 = arith.addf %51, %71 : vector<16x128xf32>
    %73 = vector.extract_strided_slice %46 {offsets = [0, 32], sizes = [16, 32], strides = [1, 1]} : vector<16x128xbf16> to vector<16x32xbf16>
    %cst_45 = arith.constant dense<0.000000e+00> : vector<16x16xf32>
    %74 = tpu.matmul %73, %52, %cst_45 {dimension_numbers = #tpu.dot_dimension_numbers<[1], [1], [0], [0], [0, 0, 1, 0], [], []>} : vector<16x32xbf16>, vector<16x32xbf16>, vector<16x16xf32> -> vector<16x16xf32>
    %75 = arith.addf %74, %49 : vector<16x16xf32>
    %cst_46 = arith.constant dense<0xFF800000> : vector<16xf32>
    %76 = vector.multi_reduction <maximumf>, %75, %cst_46 [1] : vector<16x16xf32> to vector<16xf32>
    %77 = vector.shape_cast %76 : vector<16xf32> to vector<16x1xf32>
    %78 = vector.broadcast %77 : vector<16x1xf32> to vector<16x16xf32>
    %79 = arith.subf %75, %78 : vector<16x16xf32>
    %80 = math.exp %79 : vector<16x16xf32>
    %cst_47 = arith.constant dense<0.000000e+00> : vector<16xf32>
    %81 = vector.multi_reduction <add>, %80, %cst_47 [1] : vector<16x16xf32> to vector<16xf32>
    %82 = vector.shape_cast %81 : vector<16xf32> to vector<16x1xf32>
    %83 = tpu.reciprocal %82 {approx = true} : vector<16x1xf32> -> vector<16x1xf32>
    %84 = vector.broadcast %83 : vector<16x1xf32> to vector<16x16xf32>
    %85 = arith.mulf %80, %84 : vector<16x16xf32>
    %86 = arith.truncf %85 : vector<16x16xf32> to vector<16x16xbf16>
    %cst_48 = arith.constant dense<0.000000e+00> : vector<16x32xf32>
    %87 = tpu.matmul %86, %53, %cst_48 {dimension_numbers = #tpu.dot_dimension_numbers<[1], [0], [0], [1], [0, 0, 1, 1], [], []>} : vector<16x16xbf16>, vector<16x32xbf16>, vector<16x32xf32> -> vector<16x32xf32>
    %88 = arith.truncf %87 : vector<16x32xf32> to vector<16x32xbf16>
    %89 = vector.extract_strided_slice %50 {offsets = [32, 0], sizes = [32, 128], strides = [1, 1]} : vector<128x128xbf16> to vector<32x128xbf16>
    %cst_49 = arith.constant dense<0.000000e+00> : vector<16x128xf32>
    %90 = tpu.matmul %88, %89, %cst_49 {dimension_numbers = #tpu.dot_dimension_numbers<[1], [0], [0], [1], [0, 0, 1, 1], [], []>} : vector<16x32xbf16>, vector<32x128xbf16>, vector<16x128xf32> -> vector<16x128xf32>
    %91 = arith.addf %72, %90 : vector<16x128xf32>
    %92 = vector.extract_strided_slice %47 {offsets = [0, 32], sizes = [16, 32], strides = [1, 1]} : vector<16x64xbf16> to vector<16x32xbf16>
    %93 = vector.extract_strided_slice %48 {offsets = [0, 32], sizes = [16, 32], strides = [1, 1]} : vector<16x64xbf16> to vector<16x32xbf16>
    %94 = vector.extract_strided_slice %46 {offsets = [0, 64], sizes = [16, 32], strides = [1, 1]} : vector<16x128xbf16> to vector<16x32xbf16>
    %cst_50 = arith.constant dense<0.000000e+00> : vector<16x16xf32>
    %95 = tpu.matmul %94, %92, %cst_50 {dimension_numbers = #tpu.dot_dimension_numbers<[1], [1], [0], [0], [0, 0, 1, 0], [], []>} : vector<16x32xbf16>, vector<16x32xbf16>, vector<16x16xf32> -> vector<16x16xf32>
    %96 = arith.addf %95, %49 : vector<16x16xf32>
    %cst_51 = arith.constant dense<0xFF800000> : vector<16xf32>
    %97 = vector.multi_reduction <maximumf>, %96, %cst_51 [1] : vector<16x16xf32> to vector<16xf32>
    %98 = vector.shape_cast %97 : vector<16xf32> to vector<16x1xf32>
    %99 = vector.broadcast %98 : vector<16x1xf32> to vector<16x16xf32>
    %100 = arith.subf %96, %99 : vector<16x16xf32>
    %101 = math.exp %100 : vector<16x16xf32>
    %cst_52 = arith.constant dense<0.000000e+00> : vector<16xf32>
    %102 = vector.multi_reduction <add>, %101, %cst_52 [1] : vector<16x16xf32> to vector<16xf32>
    %103 = vector.shape_cast %102 : vector<16xf32> to vector<16x1xf32>
    %104 = tpu.reciprocal %103 {approx = true} : vector<16x1xf32> -> vector<16x1xf32>
    %105 = vector.broadcast %104 : vector<16x1xf32> to vector<16x16xf32>
    %106 = arith.mulf %101, %105 : vector<16x16xf32>
    %107 = arith.truncf %106 : vector<16x16xf32> to vector<16x16xbf16>
    %cst_53 = arith.constant dense<0.000000e+00> : vector<16x32xf32>
    %108 = tpu.matmul %107, %93, %cst_53 {dimension_numbers = #tpu.dot_dimension_numbers<[1], [0], [0], [1], [0, 0, 1, 1], [], []>} : vector<16x16xbf16>, vector<16x32xbf16>, vector<16x32xf32> -> vector<16x32xf32>
    %109 = arith.truncf %108 : vector<16x32xf32> to vector<16x32xbf16>
    %110 = vector.extract_strided_slice %50 {offsets = [64, 0], sizes = [32, 128], strides = [1, 1]} : vector<128x128xbf16> to vector<32x128xbf16>
    %cst_54 = arith.constant dense<0.000000e+00> : vector<16x128xf32>
    %111 = tpu.matmul %109, %110, %cst_54 {dimension_numbers = #tpu.dot_dimension_numbers<[1], [0], [0], [1], [0, 0, 1, 1], [], []>} : vector<16x32xbf16>, vector<32x128xbf16>, vector<16x128xf32> -> vector<16x128xf32>
    %112 = arith.addf %91, %111 : vector<16x128xf32>
    %113 = vector.extract_strided_slice %46 {offsets = [0, 96], sizes = [16, 32], strides = [1, 1]} : vector<16x128xbf16> to vector<16x32xbf16>
    %cst_55 = arith.constant dense<0.000000e+00> : vector<16x16xf32>
    %114 = tpu.matmul %113, %92, %cst_55 {dimension_numbers = #tpu.dot_dimension_numbers<[1], [1], [0], [0], [0, 0, 1, 0], [], []>} : vector<16x32xbf16>, vector<16x32xbf16>, vector<16x16xf32> -> vector<16x16xf32>
    %115 = arith.addf %114, %49 : vector<16x16xf32>
    %cst_56 = arith.constant dense<0xFF800000> : vector<16xf32>
    %116 = vector.multi_reduction <maximumf>, %115, %cst_56 [1] : vector<16x16xf32> to vector<16xf32>
    %117 = vector.shape_cast %116 : vector<16xf32> to vector<16x1xf32>
    %118 = vector.broadcast %117 : vector<16x1xf32> to vector<16x16xf32>
    %119 = arith.subf %115, %118 : vector<16x16xf32>
    %120 = math.exp %119 : vector<16x16xf32>
    %cst_57 = arith.constant dense<0.000000e+00> : vector<16xf32>
    %121 = vector.multi_reduction <add>, %120, %cst_57 [1] : vector<16x16xf32> to vector<16xf32>
    %122 = vector.shape_cast %121 : vector<16xf32> to vector<16x1xf32>
    %123 = tpu.reciprocal %122 {approx = true} : vector<16x1xf32> -> vector<16x1xf32>
    %124 = vector.broadcast %123 : vector<16x1xf32> to vector<16x16xf32>
    %125 = arith.mulf %120, %124 : vector<16x16xf32>
    %126 = arith.truncf %125 : vector<16x16xf32> to vector<16x16xbf16>
    %cst_58 = arith.constant dense<0.000000e+00> : vector<16x32xf32>
    %127 = tpu.matmul %126, %93, %cst_58 {dimension_numbers = #tpu.dot_dimension_numbers<[1], [0], [0], [1], [0, 0, 1, 1], [], []>} : vector<16x16xbf16>, vector<16x32xbf16>, vector<16x32xf32> -> vector<16x32xf32>
    %128 = arith.truncf %127 : vector<16x32xf32> to vector<16x32xbf16>
    %129 = vector.extract_strided_slice %50 {offsets = [96, 0], sizes = [32, 128], strides = [1, 1]} : vector<128x128xbf16> to vector<32x128xbf16>
    %cst_59 = arith.constant dense<0.000000e+00> : vector<16x128xf32>
    %130 = tpu.matmul %128, %129, %cst_59 {dimension_numbers = #tpu.dot_dimension_numbers<[1], [0], [0], [1], [0, 0, 1, 1], [], []>} : vector<16x32xbf16>, vector<32x128xbf16>, vector<16x128xf32> -> vector<16x128xf32>
    %131 = arith.addf %112, %130 : vector<16x128xf32>
    %132 = arith.addf %0, %131 : vector<16x128xf32>
    %133 = arith.mulf %132, %132 : vector<16x128xf32>
    %cst_60 = arith.constant dense<0.000000e+00> : vector<16xf32>
    %134 = vector.multi_reduction <add>, %133, %cst_60 [1] : vector<16x128xf32> to vector<16xf32>
    %135 = vector.shape_cast %134 : vector<16xf32> to vector<16x1xf32>
    %cst_61 = arith.constant 1.280000e+02 : f32
    %136 = vector.broadcast %cst_61 : f32 to vector<16x1xf32>
    %137 = arith.divf %135, %136 : vector<16x1xf32>
    %cst_62 = arith.constant 9.99999997E-7 : f32
    %138 = vector.broadcast %cst_62 : f32 to vector<16x1xf32>
    %139 = arith.addf %137, %138 : vector<16x1xf32>
    %140 = math.rsqrt %139 : vector<16x1xf32>
    %141 = vector.broadcast %140 : vector<16x1xf32> to vector<16x128xf32>
    %142 = arith.mulf %132, %141 : vector<16x128xf32>
    %c0_63 = arith.constant 0 : index
    %c0_64 = arith.constant 0 : index
    %143 = vector.load %arg17[%c0_63, %c0_64] : memref<1x128xf32, #tpu.memory_space<vmem>>, vector<1x128xf32>
    %144 = vector.broadcast %143 : vector<1x128xf32> to vector<16x128xf32>
    %145 = arith.mulf %142, %144 : vector<16x128xf32>
    %146 = arith.truncf %145 : vector<16x128xf32> to vector<16x128xbf16>
    %c0_65 = arith.constant 0 : index
    %c0_66 = arith.constant 0 : index
    %147 = vector.load %arg18[%c0_65, %c0_66] : memref<128x256xbf16, #tpu.memory_space<vmem>>, vector<128x256xbf16>
    %cst_67 = arith.constant dense<0.000000e+00> : vector<16x256xf32>
    %148 = tpu.matmul %146, %147, %cst_67 {dimension_numbers = #tpu.dot_dimension_numbers<[1], [0], [0], [1], [0, 0, 1, 1], [], []>} : vector<16x128xbf16>, vector<128x256xbf16>, vector<16x256xf32> -> vector<16x256xf32>
    %c0_68 = arith.constant 0 : index
    %c0_69 = arith.constant 0 : index
    %149 = vector.load %arg19[%c0_68, %c0_69] : memref<128x256xbf16, #tpu.memory_space<vmem>>, vector<128x256xbf16>
    %cst_70 = arith.constant dense<0.000000e+00> : vector<16x256xf32>
    %150 = tpu.matmul %146, %149, %cst_70 {dimension_numbers = #tpu.dot_dimension_numbers<[1], [0], [0], [1], [0, 0, 1, 1], [], []>} : vector<16x128xbf16>, vector<128x256xbf16>, vector<16x256xf32> -> vector<16x256xf32>
    %151 = arith.negf %148 : vector<16x256xf32>
    %152 = math.exp %151 : vector<16x256xf32>
    %cst_71 = arith.constant 1.000000e+00 : f32
    %153 = vector.broadcast %cst_71 : f32 to vector<16x256xf32>
    %154 = arith.addf %153, %152 : vector<16x256xf32>
    %155 = arith.divf %153, %154 : vector<16x256xf32>
    %156 = arith.mulf %148, %155 : vector<16x256xf32>
    %157 = arith.mulf %156, %150 : vector<16x256xf32>
    %158 = arith.truncf %157 : vector<16x256xf32> to vector<16x256xbf16>
    %c0_72 = arith.constant 0 : index
    %c0_73 = arith.constant 0 : index
    %159 = vector.load %arg20[%c0_72, %c0_73] : memref<256x128xbf16, #tpu.memory_space<vmem>>, vector<256x128xbf16>
    %cst_74 = arith.constant dense<0.000000e+00> : vector<16x128xf32>
    %160 = tpu.matmul %158, %159, %cst_74 {dimension_numbers = #tpu.dot_dimension_numbers<[1], [0], [0], [1], [0, 0, 1, 1], [], []>} : vector<16x256xbf16>, vector<256x128xbf16>, vector<16x128xf32> -> vector<16x128xf32>
    %161 = arith.addf %132, %160 : vector<16x128xf32>
    %c0_75 = arith.constant 0 : index
    %c0_76 = arith.constant 0 : index
    %162 = vector.load %arg21[%c0_75, %c0_76] : memref<16x128xf32, #tpu.memory_space<vmem>>, vector<16x128xf32>
    tpu.vector_store %arg21[%c0_75, %c0_76], %161 {strides = array<i32>} : memref<16x128xf32, #tpu.memory_space<vmem>>, vector<16x128xf32>,
    return
  }
  func.func @transform_0(%arg0: i32) -> (i32, i32) {
    %c0_i32 = arith.constant 0 : i32
    %c0_i32_0 = arith.constant 0 : i32
    %c0_i32_1 = arith.constant 0 : i32
    return %c0_i32, %c0_i32_0 : i32, i32
  }
  func.func @transform_1(%arg0: i32) -> (i32, i32) {
    %c0_i32 = arith.constant 0 : i32
    %c0_i32_0 = arith.constant 0 : i32
    %c0_i32_1 = arith.constant 0 : i32
    return %c0_i32, %c0_i32_0 : i32, i32
  }
  func.func @transform_2(%arg0: i32) -> (i32, i32) {
    %c0_i32 = arith.constant 0 : i32
    %c0_i32_0 = arith.constant 0 : i32
    %c0_i32_1 = arith.constant 0 : i32
    return %c0_i32, %c0_i32_0 : i32, i32
  }
  func.func @transform_3(%arg0: i32) -> (i32, i32) {
    %c0_i32 = arith.constant 0 : i32
    %c0_i32_0 = arith.constant 0 : i32
    %c0_i32_1 = arith.constant 0 : i32
    return %c0_i32, %c0_i32_0 : i32, i32
  }
  func.func @transform_4(%arg0: i32) -> (i32, i32) {
    %c0_i32 = arith.constant 0 : i32
    %c0_i32_0 = arith.constant 0 : i32
    %c0_i32_1 = arith.constant 0 : i32
    return %c0_i32, %c0_i32_0 : i32, i32
  }
  func.func @transform_5(%arg0: i32) -> (i32, i32) {
    %c0_i32 = arith.constant 0 : i32
    %c0_i32_0 = arith.constant 0 : i32
    %c0_i32_1 = arith.constant 0 : i32
    return %c0_i32, %c0_i32_0 : i32, i32
  }
  func.func @transform_6(%arg0: i32) -> (i32, i32) {
    %c0_i32 = arith.constant 0 : i32
    %c0_i32_0 = arith.constant 0 : i32
    %c0_i32_1 = arith.constant 0 : i32
    return %c0_i32, %c0_i32_0 : i32, i32
  }
  func.func @transform_7(%arg0: i32) -> (i32, i32) {
    %c0_i32 = arith.constant 0 : i32
    %c0_i32_0 = arith.constant 0 : i32
    %c0_i32_1 = arith.constant 0 : i32
    return %c0_i32, %c0_i32_0 : i32, i32
  }
  func.func @transform_8(%arg0: i32) -> (i32, i32) {
    %c0_i32 = arith.constant 0 : i32
    %c0_i32_0 = arith.constant 0 : i32
    %c0_i32_1 = arith.constant 0 : i32
    return %c0_i32, %c0_i32_0 : i32, i32
  }
  func.func @transform_9(%arg0: i32) -> (i32, i32) {
    %c0_i32 = arith.constant 0 : i32
    %c0_i32_0 = arith.constant 0 : i32
    %c0_i32_1 = arith.constant 0 : i32
    return %c0_i32, %c0_i32_0 : i32, i32
  }
  func.func @transform_10(%arg0: i32) -> (i32, i32) {
    %c0_i32 = arith.constant 0 : i32
    %c0_i32_0 = arith.constant 0 : i32
    %c0_i32_1 = arith.constant 0 : i32
    return %c0_i32, %c0_i32_0 : i32, i32
  }
  func.func @transform_11(%arg0: i32) -> (i32, i32) {
    %c0_i32 = arith.constant 0 : i32
    %c0_i32_0 = arith.constant 0 : i32
    %c0_i32_1 = arith.constant 0 : i32
    return %c0_i32, %c0_i32_0 : i32, i32
  }
  func.func @transform_12(%arg0: i32) -> (i32, i32) {
    %c0_i32 = arith.constant 0 : i32
    %c0_i32_0 = arith.constant 0 : i32
    %c0_i32_1 = arith.constant 0 : i32
    return %c0_i32, %c0_i32_0 : i32, i32
  }
  func.func @transform_13(%arg0: i32) -> (i32, i32) {
    %c0_i32 = arith.constant 0 : i32
    %c0_i32_0 = arith.constant 0 : i32
    %c0_i32_1 = arith.constant 0 : i32
    return %c0_i32, %c0_i32_0 : i32, i32
  }
  func.func @transform_14(%arg0: i32) -> (i32, i32) {
    %c0_i32 = arith.constant 0 : i32
    %c0_i32_0 = arith.constant 0 : i32
    %c0_i32_1 = arith.constant 0 : i32
    return %c0_i32, %c0_i32_0 : i32, i32
  }
  func.func @transform_15(%arg0: i32) -> (i32, i32) {
    %c0_i32 = arith.constant 0 : i32
    %c0_i32_0 = arith.constant 0 : i32
    %c0_i32_1 = arith.constant 0 : i32
    return %c0_i32, %c0_i32_0 : i32, i32
  }
  func.func @transform_16(%arg0: i32) -> (i32, i32) {
    %c0_i32 = arith.constant 0 : i32
    %c0_i32_0 = arith.constant 0 : i32
    %c0_i32_1 = arith.constant 0 : i32
    return %c0_i32, %c0_i32_0 : i32, i32
  }
  func.func @transform_17(%arg0: i32) -> (i32, i32) {
    %c0_i32 = arith.constant 0 : i32
    %c0_i32_0 = arith.constant 0 : i32
    %c0_i32_1 = arith.constant 0 : i32
    return %c0_i32, %c0_i32_0 : i32, i32
  }
  func.func @transform_18(%arg0: i32) -> (i32, i32) {
    %c0_i32 = arith.constant 0 : i32
    %c0_i32_0 = arith.constant 0 : i32
    %c0_i32_1 = arith.constant 0 : i32
    return %c0_i32, %c0_i32_0 : i32, i32
  }
  func.func @transform_19(%arg0: i32) -> (i32, i32) {
    %c0_i32 = arith.constant 0 : i32
    %c0_i32_0 = arith.constant 0 : i32
    %c0_i32_1 = arith.constant 0 : i32
    return %c0_i32, %c0_i32_0 : i32, i32
  }
  func.func @transform_20(%arg0: i32) -> (i32, i32) {
    %c0_i32 = arith.constant 0 : i32
    %c0_i32_0 = arith.constant 0 : i32
    %c0_i32_1 = arith.constant 0 : i32
    return %c0_i32, %c0_i32_0 : i32, i32
  }
}

</mosaic_0001>

<bundles_post_ra>
// kernel: tpu_custom_call.1
= control target key start
LH: loop header
LB: loop body
LE: loop exit
PB: predicated region body
PF: predicated region fallthrough
CT: control target
= control target key end

     0   :  { %s2804_s0 = inlined_call_operand.vmem [shape: f32[16,128], index: 0, kind: input, shape index: {}]   ;;  %s2805_s1 = inlined_call_operand.vmem [shape: f32[16,128], index: 1, kind: input, shape index: {}]   ;;  %s2806_s2 = inlined_call_operand.hbm [shape: f32[16,128], index: 2, kind: input, shape index: {}]   ;;  %s2807_s3 = inlined_call_operand.hbm [shape: f32[16,64], index: 3, kind: input, shape index: {}]   ;;  %s2808_s4 = inlined_call_operand.hbm [shape: f32[16,64], index: 4, kind: input, shape index: {}]   ;;  %s2809_s5 = inlined_call_operand.hbm [shape: f32[16,16], index: 5, kind: input, shape index: {}]   ;;  %s2810_s6 = inlined_call_operand.vmem [shape: f32[128,128], index: 6, kind: input, shape index: {}]   ;;  %s2811_s7 = inlined_call_operand.hbm [shape: f32[64,64], index: 7, kind: input, shape index: {}]   ;;  %s2812_s8 = inlined_call_operand.vmem [shape: f32[1,128], index: 8, kind: input, shape index: {}]   ;;  %s2813_s9 = inlined_call_operand.hbm [shape: bf16[128,128], index: 9, kind: input, shape index: {}]   ;;  %s2814_s10 = inlined_call_operand.vmem [shape: f32[1,128], index: 10, kind: input, shape index: {}]   ;;  %s2815_s11 = inlined_call_operand.vmem [shape: bf16[128,64], index: 11, kind: input, shape index: {}]   ;;  %s2816_s12 = inlined_call_operand.vmem [shape: f32[1,64], index: 12, kind: input, shape index: {}]   ;;  %s2817_s13 = inlined_call_operand.vmem [shape: bf16[128,64], index: 13, kind: input, shape index: {}]   ;;  %s2818_s14 = inlined_call_operand.vmem [shape: f32[1,64], index: 14, kind: input, shape index: {}]   ;;  %s2819_s15 = inlined_call_operand.hbm [shape: bf16[128,128], index: 15, kind: input, shape index: {}]   ;;  %s2820_s16 = inlined_call_operand.vmem [shape: f32[1,128], index: 16, kind: input, shape index: {}]   ;;  %s2821_s17 = inlined_call_operand.hbm [shape: bf16[128,256], index: 17, kind: input, shape index: {}]   ;;  %s2822_s18 = inlined_call_operand.hbm [shape: bf16[128,256], index: 18, kind: input, shape index: {}]   ;;  %s2823_s19 = inlined_call_operand.hbm [shape: bf16[256,128], index: 19, kind: input, shape index: {}]   ;;  %s2824_s20 = inlined_call_operand.hbm [shape: f32[16,128], index: 20, kind: output, shape index: {}]  }
   0x1   :  { %2827 = sst [smem:[#allocation27_spill]] %s2804_s0 }
   0x2   :  { %2828 = sst [smem:[#allocation28_spill]] %s2805_s1 }
   0x3   :  { %2829 = sst [smem:[#allocation29_spill]] %s2806_s2 }
   0x4   :  { %2830 = sst [smem:[#allocation30_spill]] %s2807_s3 }
   0x5   :  { %2831 = sst [smem:[#allocation31_spill]] %s2808_s4 }
   0x6   :  { %2832 = sst [smem:[#allocation32_spill]] %s2824_s20 }
   0x7   :  { %25 = vsyncpa [#allocation3], 0 }
   0x8   :  { %26 = vsyncpa [#allocation6], 0 }
   0x9   :  { %27 = vsyncpa [#allocation9], 0 }
   0xa   :  { %28 = vsyncpa [#allocation12], 0 }
   0xb   :  { %29 = vsyncpa [#allocation15], 0 }
   0xc   :  { %30 = vsyncpa [#allocation18], 0 }
   0xd   :  { %31 = vsyncpa [#allocation4], 0  ;;  %s2833_s23 = sld [smem:[#allocation30_spill]]  ;;  %s2363_s2 = smov [#allocation5]  }
   0xe   :  { %s55_s25 = sshll.u32 %s2363_s2, 4  ;;  %s79_s27 = sshll.u32 %s2809_s5, 4  ;;  %s56_s25 = int_to_ptr.vmem [resolvable:$true] %s55_s25  ;;  %s80_s27 = int_to_ptr.hbm [resolvable:$true] %s79_s27 }
   0xf   :  { %s2364_s28 = smov 128   ;;  %s2365_s4 = smov 8  }
  0x10   :  { %s2366_s29 = smov [#allocation8]   ;;  %s109_s1 = sshll.u32 %s2813_s9, 4  ;;  %s110_s1 = int_to_ptr.hbm [resolvable:$true] %s109_s1 }
  0x11   :  { %s81_s30 = sshll.u32 %s2366_s29, 4  ;;  %s2367_s5 = smov [#allocation11]   ;;  %s82_s30 = int_to_ptr.vmem [resolvable:$true] %s81_s30 }
  0x12   :  { %87 = dma.hbm_to_vmem [thread:$0]  %s80_s27, 256, %s82_s30, [#allocation9], %s2364_s28, %s2364_s28, %s2365_s4  }
  0x13   :  { %s53_s24 = sshll.u32 %s2833_s23, 4  ;;  %s111_s22 = sshll.u32 %s2367_s5, 4  ;;  %s54_s24 = int_to_ptr.hbm [resolvable:$true] %s53_s24  ;;  %s112_s22 = int_to_ptr.vmem [resolvable:$true] %s111_s22 }
  0x14   :  { %61 = dma.hbm_to_vmem [thread:$0]  %s54_s24, 256, %s56_s25, [#allocation6], %s2364_s28, %s2364_s28, %s2365_s4  }
  0x15   :  { %s147_s24 = sshll.u32 %s2821_s17, 4  ;;  %s2368_s25 = smov 64   ;;  %s148_s24 = int_to_ptr.hbm [resolvable:$true] %s147_s24 }
  0x16   :  { %s2369_s3 = smov 4   ;;  %s2370_s9 = smov [#allocation14]  }
  0x17   :  { %117 = dma.hbm_to_vmem [thread:$0]  %s110_s1, 1024, %s112_s22, [#allocation12], %s2368_s25, %s2368_s25, %s2369_s3  }
  0x18   :  { %s149_s26 = sshll.u32 %s2370_s9, 4  ;;  %s2834_s21 = sld [smem:[#allocation29_spill]]  ;;  %s150_s26 = int_to_ptr.vmem [resolvable:$true] %s149_s26 }
  0x19   :  { %155 = dma.hbm_to_vmem [thread:$0]  %s148_s24, 2048, %s150_s26, [#allocation15], %s2364_s28, %s2364_s28, %s2365_s4  }
  0x1a   :  { %s2835_s5 = sld [smem:[#allocation31_spill]]  ;;  %s2371_s2 = smov [#allocation2]  }
  0x1b   :  { %s42_s20 = sshll.u32 %s2371_s2, 4  ;;  %s2372_s1 = smov [#allocation7]   ;;  %s43_s20 = int_to_ptr.vmem [resolvable:$true] %s42_s20 }
  0x1c   :  { %s68_s22 = sshll.u32 %s2372_s1, 4  ;;  %s94_s0 = sshll.u32 %s2811_s7, 4  ;;  %s69_s22 = int_to_ptr.vmem [resolvable:$true] %s68_s22  ;;  %s95_s0 = int_to_ptr.hbm [resolvable:$true] %s94_s0 }
  0x1d   :  { %s2373_s17 = smov [#allocation10]   ;;  %s160_s2 = sshll.u32 %s2822_s18, 4  ;;  %s161_s2 = int_to_ptr.hbm [resolvable:$true] %s160_s2 }
  0x1e   :  { %s40_s27 = sshll.u32 %s2834_s21, 4  ;;  %s132_s21 = sshll.u32 %s2819_s15, 4  ;;  %s41_s27 = int_to_ptr.hbm [resolvable:$true] %s40_s27  ;;  %s133_s21 = int_to_ptr.hbm [resolvable:$true] %s132_s21 }
  0x1f   :  { %48 = dma.hbm_to_vmem [thread:$0]  %s41_s27, 256, %s43_s20, [#allocation3], %s2364_s28, %s2364_s28, %s2365_s4  }
  0x20   :  { %s66_s23 = sshll.u32 %s2835_s5, 4  ;;  %s96_s30 = sshll.u32 %s2373_s17, 4  ;;  %s67_s23 = int_to_ptr.hbm [resolvable:$true] %s66_s23  ;;  %s97_s30 = int_to_ptr.vmem [resolvable:$true] %s96_s30 }
  0x21   :  { %74 = dma.hbm_to_vmem [thread:$0]  %s67_s23, 256, %s69_s22, [#allocation6], %s2364_s28, %s2364_s28, %s2365_s4  }
  0x22   :  { %102 = dma.hbm_to_vmem [thread:$0]  %s95_s0, 1024, %s97_s30, [#allocation9], %s2364_s28, %s2364_s28, %s2365_s4  }
  0x23   :  { %s2374_s20 = smov [#allocation13]   ;;  %s173_s1 = sshll.u32 %s2823_s19, 4  ;;  %s174_s1 = int_to_ptr.hbm [resolvable:$true] %s173_s1 }
  0x24   :  { %s134_s7 = sshll.u32 %s2374_s20, 4  ;;  %s2375_s22 = smov [#allocation16]   ;;  %s135_s7 = int_to_ptr.vmem [resolvable:$true] %s134_s7 }
  0x25   :  { %140 = dma.hbm_to_vmem [thread:$0]  %s133_s21, 1024, %s135_s7, [#allocation12], %s2368_s25, %s2368_s25, %s2369_s3  }
  0x26   :  { %s162_s9 = sshll.u32 %s2375_s22, 4  ;;  %s2376_s29 = smov [#allocation17]   ;;  %s163_s9 = int_to_ptr.vmem [resolvable:$true] %s162_s9 }
  0x27   :  { %168 = dma.hbm_to_vmem [thread:$0]  %s161_s2, 2048, %s163_s9, [#allocation15], %s2364_s28, %s2364_s28, %s2365_s4  }
  0x28   :  { %s175_s18 = sshll.u32 %s2376_s29, 4  ;;  %s176_s18 = int_to_ptr.vmem [resolvable:$true] %s175_s18 }
  0x29   :  { %181 = dma.hbm_to_vmem [thread:$0]  %s174_s1, 2048, %s176_s18, [#allocation18], %s2368_s25, %s2368_s25, %s2369_s3  }
  0x2a   :  { %2349 = dma.done.wait [#allocation3], 256  }
  0x2b   :  { %2350 = vsyncadd [#allocation3], 4294967040 }
  0x2c   :  { %2351 = dma.done.wait [#allocation6], 512  }
  0x2d   :  { %2352 = vsyncadd [#allocation6], 4294966784 }
  0x2e   :  { %2353 = dma.done.wait [#allocation9], 1280  }
  0x2f   :  { %2354 = vsyncadd [#allocation9], 4294966016 }
  0x30   :  { %2355 = dma.done.wait [#allocation12], 2048  }
  0x31   :  { %2356 = vsyncadd [#allocation12], 4294965248 }
  0x32   :  { %2357 = dma.done.wait [#allocation15], 4096  }
  0x33   :  { %2358 = vsyncadd [#allocation15], 4294963200 }
  0x34   :  { %2359 = dma.done.wait [#allocation18], 2048  }
  0x35   :  { %2360 = vsyncadd [#allocation18], 4294965248  ;;  %s2836_s24 = sld [smem:[#allocation27_spill]]  ;;  %v1931_v4 = vld [vmem:[#allocation11 + $0x38] sm:$0xff]  ;;  %v2377_v7 = vmov 128.0   ;;  %v1930_v8 = vld [vmem:[#allocation11 + $0x30] sm:$0xff] }
  0x36   :  { %v1939_v5 = vld [vmem:[%s2815_s11 + $0x38] sm:$0xff]  ;;  %2027 = vrcp.f32 %v2377_v7  ;;  %339 = vmatpush.bf16.msra.mxu0 %v1931_v4  ;;  %v1938_v9 = vld [vmem:[%s2815_s11 + $0x30] sm:$0xff]  ;;  %v1929_v12 = vld [vmem:[#allocation11 + $0x28] sm:$0xff]  ;;  %vm578_vm7 = vcmask 523264   ;;  %vm650_vm8 = vcmask 261120   ;;  %s2378_s15 = smov 96  }
  0x37   :  { %v1947_v6 = vld [vmem:[%s2817_s13 + $0x38] sm:$0xff]  ;;  %421 = vmatpush.bf16.msra.mxu1 %v1939_v5  ;;  %v1946_v10 = vld [vmem:[%s2817_s13 + $0x30] sm:$0xff]  ;;  %v1937_v13 = vld [vmem:[%s2815_s11 + $0x28] sm:$0xff]  ;;  %vm671_vm9 = vcmask 130048   ;;  %s2844_s18 = sld [smem:[#allocation32_spill]] }
  0x38   :  { %503 = vmatpush.bf16.msra.mxu2 %v1947_v6  ;;  %v1945_v14 = vld [vmem:[%s2817_s13 + $0x28] sm:$0xff]  ;;  %v1928_v16 = vld [vmem:[#allocation11 + $0x20] sm:$0xff]  ;;  %v1927_v20 = vld [vmem:[#allocation11 + $0x18] sm:$0xff] }
  0x39   :  { %v1936_v17 = vld [vmem:[%s2815_s11 + $0x20] sm:$0xff]  ;;  %v1935_v21 = vld [vmem:[%s2815_s11 + $0x18] sm:$0xff]  ;;  %v1926_v24 = vld [vmem:[#allocation11 + $0x10] sm:$0xff] }
  0x3a   :  { %340 = vmatpush.bf16.msra.mxu0 %v1930_v8  ;;  %v1944_v18 = vld [vmem:[%s2817_s13 + $0x20] sm:$0xff]  ;;  %v1943_v22 = vld [vmem:[%s2817_s13 + $0x18] sm:$0xff]  ;;  %v1934_v25 = vld [vmem:[%s2815_s11 + $0x10] sm:$0xff] }
  0x3b   :  { %v2549_v0 = vld [vmem:[%s2836_s24] sm:$0xff]  ;;  %v2556_v2 = vld [vmem:[%s2836_s24 + $0x8] sm:$0xff]  ;;  %422 = vmatpush.bf16.msra.mxu1 %v1938_v9  ;;  %v1942_v26 = vld [vmem:[%s2817_s13 + $0x10] sm:$0xff] }
  0x3c   :  { %v225_v1 = vmul.f32 %v2549_v0, %v2549_v0  ;;  %v226_v3 = vmul.f32 %v2556_v2, %v2556_v2  ;;  %v2028_v11 = vpop.eup %2027  ;;  %504 = vmatpush.bf16.msra.mxu2 %v1946_v10  ;;  %v1925_v28 = vld [vmem:[#allocation11 + $0x8] sm:$0xff]  ;;  %v1924_v32 = vld [vmem:[#allocation11] sm:$0xff]  ;;  %v536_v38 = vld [vmem:[%s2810_s6 + $0x78] sm:$0xff] }
  0x3d   :  { %v232_v15 = vmul.f32 128.0, %v2028_v11  ;;  %vm236_vm0 = vweird.f32 %v2028_v11  ;;  %v1933_v29 = vld [vmem:[%s2815_s11 + $0x8] sm:$0xff]  ;;  %v1932_v33 = vld [vmem:[%s2815_s11] sm:$0xff]  ;;  %v535_v39 = vld [vmem:[%s2810_s6 + $0x70] sm:$0xff]  ;;  %537 = vmatpush.msra.mxu3 %v536_v38  ;;  %s1568_s19 = sshll.u32 %s2844_s18, 4  ;;  %s1569_s19 = int_to_ptr.hbm [resolvable:$true] %s1568_s19 }
  0x3e   :  { %227 = vadd.xlane.f32.xlu0 %v225_v1  ;;  %341 = vmatpush.bf16.msra.mxu0 %v1929_v12  ;;  %v1941_v30 = vld [vmem:[%s2817_s13 + $0x8] sm:$0xff]  ;;  %v1940_v34 = vld [vmem:[%s2817_s13] sm:$0xff]  ;;  %v577_v43 = vld [vmem:[#allocation10 + $0x38] sm:$0xff] }
  0x3f   :  { %423 = vmatpush.bf16.msra.mxu1 %v1937_v13  ;;  %v233_v19 = vsub.f32 1.0, %v232_v15  ;;  %v534_v41 = vld [vmem:[%s2810_s6 + $0x68] sm:$0xff]  ;;  %538 = vmatpush.msra.mxu3 %v535_v39  ;;  %v576_v44 = vld [vmem:[#allocation10 + $0x30] sm:$0xff]  ;;  %v533_v45 = vld [vmem:[%s2810_s6 + $0x60] sm:$0xff] }
  0x40   :  { %505 = vmatpush.bf16.msra.mxu2 %v1945_v14  ;;  %v575_v48 = vld [vmem:[#allocation10 + $0x28] sm:$0xff]  ;;  %v532_v50 = vld [vmem:[%s2810_s6 + $0x58] sm:$0xff]  ;;  %v574_v51 = vld [vmem:[#allocation10 + $0x20] sm:$0xff] }
  0x41   :  { %v234_v23 = vmul.f32 %v2028_v11, %v233_v19  ;;  %539 = vmatpush.msra.mxu3 %v534_v41  ;;  %v531_v53 = vld [vmem:[%s2810_s6 + $0x50] sm:$0xff]  ;;  %v573_v54 = vld [vmem:[#allocation10 + $0x18] sm:$0xff]  ;;  %v530_v56 = vld [vmem:[%s2810_s6 + $0x48] sm:$0xff] }
  0x42   :  { %342 = vmatpush.bf16.msra.mxu0 %v1928_v16  ;;  %v572_v57 = vld [vmem:[#allocation10 + $0x10] sm:$0xff]  ;;  %v529_v59 = vld [vmem:[%s2810_s6 + $0x40] sm:$0xff]  ;;  %v528_v62 = vld [vmem:[%s2810_s6 + $0x38] sm:$0xff] }
  0x43   :  { %424 = vmatpush.bf16.msra.mxu1 %v1936_v17  ;;  %v235_v27 = vadd.f32 %v2028_v11, %v234_v23  ;;  %540 = vmatpush.msra.mxu3 %v533_v45  ;;  %v526_v5 = vld [vmem:[%s2810_s6 + $0x28] sm:$0xff]  ;;  %v525_v8 = vld [vmem:[%s2810_s6 + $0x20] sm:$0xff]  ;;  %v524_v10 = vld [vmem:[%s2810_s6 + $0x18] sm:$0xff] }
  0x44   :  { %506 = vmatpush.bf16.msra.mxu2 %v1944_v18  ;;  %v2022_v12 = vld [vmem:[%s2812_s8] ss:$0 sm:$0xff]  ;;  %v523_v14 = vld [vmem:[%s2810_s6 + $0x10] sm:$0xff]  ;;  %v522_v19 = vld [vmem:[%s2810_s6 + $0x8] sm:$0xff] }
  0x45   :  { %v2602_v31 = vsel %vm236_vm0, %v2028_v11, %v235_v27  ;;  %541 = vmatpush.msra.mxu3 %v532_v50  ;;  %v2023_v23 = vld [vmem:[%s2814_s10] ss:$0 sm:$0xff] }
  0x46   :  { %229 = vadd.xlane.f32.xlu0 %v226_v3  ;;  %343 = vmatpush.bf16.msra.mxu0 %v1927_v20  ;;  %v527_v3 = vld [vmem:[%s2810_s6 + $0x30] sm:$0xff]  ;;  %v571_v20 = vld [vmem:[#allocation10 + $0x8] sm:$0xff]  ;;  %v608_v45 = vld [vmem:[#allocation7] sm:$0xff] }
  0x47   :  { %425 = vmatpush.bf16.msra.mxu1 %v1935_v21  ;;  %542 = vmatpush.msra.mxu3 %v531_v53  ;;  %v521_v21 = vld [vmem:[%s2810_s6] sm:$0xff]  ;;  %v609_v53 = vld [vmem:[#allocation7 + $0x8] sm:$0xff] }
  0x48   :  { %507 = vmatpush.bf16.msra.mxu2 %v1943_v22  ;;  %v570_v22 = vld [vmem:[#allocation10] sm:$0xff] }
  0x49   :  { %543 = vmatpush.msra.mxu3 %v530_v56 }
  0x4a   :  { %344 = vmatpush.bf16.msra.mxu0 %v1926_v24  ;;  %v2024_v24 = vld [vmem:[%s2816_s12] ss:$0 sm:$0xff] }
  0x4b   :  { %426 = vmatpush.bf16.msra.mxu1 %v1934_v25  ;;  %544 = vmatpush.msra.mxu3 %v529_v59 }
  0x4c   :  { %508 = vmatpush.bf16.msra.mxu2 %v1942_v26 }
  0x4d   :  { %545 = vmatpush.msra.mxu3 %v528_v62 }
  0x4e   :  { %345 = vmatpush.bf16.msra.mxu0 %v1925_v28 }
  0x4f   :  { %427 = vmatpush.bf16.msra.mxu1 %v1933_v29  ;;  %546 = vmatpush.msra.mxu3 %v527_v3 }
  0x50   :  { %509 = vmatpush.bf16.msra.mxu2 %v1941_v30  ;;  %v2025_v30 = vld [vmem:[%s2818_s14] ss:$0 sm:$0xff]  ;;  %s2837_s14 = sld [smem:[#allocation28_spill]] }
  0x51   :  { %547 = vmatpush.msra.mxu3 %v526_v5 }
  0x52   :  { %346 = vmatpush.bf16.msra.mxu0 %v1924_v32 }
  0x53   :  { %428 = vmatpush.bf16.msra.mxu1 %v1932_v33  ;;  %548 = vmatpush.msra.mxu3 %v525_v8 }
  0x54   :  { %510 = vmatpush.bf16.msra.mxu2 %v1940_v34 }
  0x55   :  { %549 = vmatpush.msra.mxu3 %v524_v10 }
  0x56   :  { %593 = vmatpush.msrb.mxu0 %v577_v43  ;;  %v517_v50 = vld [vmem:[%s2837_s14] sm:$0xff] }
  0x57   :  { %550 = vmatpush.msra.mxu3 %v523_v14 }
  0x58   :  { %594 = vmatpush.msrb.mxu0 %v576_v44 }
  0x59   :  { %551 = vmatpush.msra.mxu3 %v522_v19 }
  0x5a   :  { %595 = vmatpush.msrb.mxu0 %v575_v48  ;;  %v560_v48 = vld [vmem:[#allocation2] sm:$0xff] }
  0x5b   :  { %552 = vmatpush.msra.mxu3 %v521_v21 }
  0x5c   :  { %596 = vmatpush.msrb.mxu0 %v574_v51  ;;  %v567_v51 = vld [vmem:[#allocation5 + $0x8] sm:$0xff] }
  0x5e   :  { %597 = vmatpush.msrb.mxu0 %v573_v54 }
  0x60   :  { %598 = vmatpush.msrb.mxu0 %v572_v57 }
  0x62   :  { %599 = vmatpush.msrb.mxu0 %v571_v20  ;;  %v2689_v20 = vld [vmem:[#allocation8] sm:$0xff] }
  0x64   :  { %600 = vmatpush.msrb.mxu0 %v570_v22 }
  0xb1   :  { %v228_v35 = vpop.xlane.xlu0 %227 }
  0xb2   :  { %v238_v36 = vmul.f32 %v2602_v31, %v228_v35 }
  0xb4   :  { %v240_v37 = vadd.f32 1e-06, %v238_v36 }
  0xb6   :  { %2029 = vrsqrt.f32 %v240_v37  ;;  %vm248_vm2 = vweird.f32 %v240_v37 }
  0xb9   :  { %v230_v40 = vpop.xlane.xlu0 %229 }
  0xba   :  { %v239_v42 = vmul.f32 %v2602_v31, %v230_v40 }
  0xbc   :  { %v2030_v46 = vpop.eup %2029  ;;  %v241_v47 = vadd.f32 1e-06, %v239_v42 }
  0xbd   :  { %v243_v49 = vmul.f32 %v2030_v46, %v240_v37  ;;  %vm249_vm1 = vweird.f32 %v2030_v46 }
  0xbe   :  { %2031 = vrsqrt.f32 %v241_v47  ;;  %vm250_vm3 = vmor %vm248_vm2, %vm249_vm1  ;;  %vm258_vm5 = vweird.f32 %v241_v47 }
  0xbf   :  { %v244_v52 = vmul.f32 %v2030_v46, %v243_v49 }
  0xc1   :  { %v245_v55 = vmul.f32 0.5, %v244_v52 }
  0xc3   :  { %v246_v58 = vsub.f32 1.5, %v245_v55 }
  0xc4   :  { %v2032_v60 = vpop.eup %2031 }
  0xc5   :  { %v253_v61 = vmul.f32 %v2032_v60, %v241_v47  ;;  %v247_v63 = vmul.f32 %v2030_v46, %v246_v58  ;;  %vm259_vm4 = vweird.f32 %v2032_v60 }
  0xc6   :  { %vm260_vm6 = vmor %vm258_vm5, %vm259_vm4 }
  0xc7   :  { %v254_v1 = vmul.f32 %v2032_v60, %v253_v61  ;;  %v251_v6 = vsel %vm250_vm3, %v2030_v46, %v247_v63  ;;  %v566_v46 = vld [vmem:[#allocation5] sm:$0xff] }
  0xc8   :  { %v262_v11 = vmul.f32 %v251_v6, %v2549_v0 }
  0xc9   :  { %v255_v4 = vmul.f32 0.5, %v254_v1  ;;  %v561_v1 = vld [vmem:[#allocation2 + $0x8] sm:$0xff] }
  0xca   :  { %v268_v16 = vmul.f32 %v2022_v12, %v262_v11 }
  0xcb   :  { %v256_v7 = vsub.f32 1.5, %v255_v4 }
  0xcd   :  { %v257_v9 = vmul.f32 %v2032_v60, %v256_v7 }
  0xcf   :  { %v261_v13 = vsel %vm260_vm6, %v2032_v60, %v257_v9  ;;  %v518_v60 = vld [vmem:[%s2837_s14 + $0x8] sm:$0xff] }
  0xd0   :  { %v263_v15 = vmul.f32 %v261_v13, %v2556_v2 }
  0xd2   :  { %v269_v17 = vmul.f32 %v2022_v12, %v263_v15 }
  0xd4   :  { %v270_v18 = vpack.c.bf16 %v269_v17, %v268_v16 }
  0xd6   :  { %347 = vmatmul.bf16.vlgmr.msra.gmra.mxu0 %v270_v18  ;;  %429 = vmatmul.bf16.vlgmr.msra.gmra.mxu1 %v270_v18 }
  0xd7   :  { %511 = vmatmul.bf16.vlgmr.msra.gmra.mxu2 %v270_v18 }
 0x153   :  { %v348_v25 = vpop.f32.mrf.mxu0  ;;  %v430_v26 = vpop.f32.mrf.mxu1 }
 0x154   :  { %v349_v27 = vadd.f32 %v2023_v23, %v348_v25  ;;  %v431_v28 = vadd.f32 %v2024_v24, %v430_v26 }
 0x156   :  { %553 = vmatmul.f32.vlgmr.msra.gmra.mxu3 %v349_v27  ;;  %1682 = vmatmul.msk.f32.vlgmr.msrb.gmra.mxu0 %vm578_vm7, %v431_v28  ;;  %v568_v49 = vmul.f32 %v566_v46, %v431_v28  ;;  %v519_v57 = vmul.f32 %v517_v50, %v349_v27  ;;  %v1948_v50 = vld [vmem:[#allocation13] sm:$0xff] }
 0x15a   :  { %v512_v29 = vpop.f32.mrf.mxu2 }
 0x15b   :  { %v350_v32 = vpop.f32.mrf.mxu0  ;;  %v432_v33 = vpop.f32.mrf.mxu1  ;;  %v513_v36 = vadd.f32 %v2025_v30, %v512_v29 }
 0x15c   :  { %v351_v34 = vadd.f32 %v2023_v23, %v350_v32  ;;  %v433_v35 = vadd.f32 %v2024_v24, %v432_v33  ;;  %v2693_v24 = vld [vmem:[#allocation8 + $0x8] sm:$0xff] }
 0x15d   :  { %v620_v38 = vpack.c.bf16 %v513_v36, %v513_v36 }
 0x15e   :  { %556 = vmatmul.f32.gmra.mxu3 %v351_v34  ;;  %1683 = vmatmul.msk.f32.gmra.mxu0 %vm578_vm7, %v433_v35  ;;  %v569_v58 = vmul.f32 %v567_v51, %v433_v35  ;;  %v520_v4 = vmul.f32 %v518_v60, %v351_v34 }
 0x15f   :  { %v697_v41 = vunpack.c.l.b16 %v620_v38 }
 0x162   :  { %v514_v37 = vpop.f32.mrf.mxu2 }
 0x163   :  { %v515_v39 = vadd.f32 %v2025_v30, %v514_v37 }
 0x165   :  { %v621_v40 = vpack.c.bf16 %v515_v39, %v515_v39 }
 0x167   :  { %v698_v42 = vunpack.c.l.b16 %v621_v40 }
 0x169   :  { %v2674_v43 = vpack.c.b16 %v698_v42, %v697_v41 }
 0x16b   :  { %711 = vmatpush.bf16.msrb.mxu2 %v2674_v43  ;;  %771 = vmatpush.bf16.msra.mxu0 %v2674_v43 }
 0x1d3   :  { %v602_v44 = vpop.f32.mrf.mxu0 }
 0x1d4   :  { %v610_v47 = vmul.f32 %v608_v45, %v602_v44 }
 0x1d6   :  { %v612_v54 = vadd.f32 %v610_v47, %v568_v49  ;;  %v1949_v49 = vld [vmem:[#allocation13 + $0x8] sm:$0xff] }
 0x1d7   :  { %829 = vmatpush.bf16.msra.mxu2 %v1949_v49 }
 0x1d8   :  { %v618_v61 = vpack.c.bf16 %v612_v54, %v612_v54 }
 0x1d9   :  { %v554_v52 = vpop.f32.mrf.mxu3 }
 0x1da   :  { %v562_v55 = vmul.f32 %v560_v48, %v554_v52  ;;  %v647_v6 = vunpack.c.l.b16 %v618_v61 }
 0x1db   :  { %v605_v56 = vpop.f32.mrf.mxu0  ;;  %830 = vmatpush.bf16.msra.mxu2 %v1948_v50 }
 0x1dc   :  { %v611_v59 = vmul.f32 %v609_v53, %v605_v56  ;;  %v564_v62 = vadd.f32 %v562_v55, %v519_v57 }
 0x1de   :  { %v613_v63 = vadd.f32 %v611_v59, %v569_v58  ;;  %v614_v7 = vmul.f32 0.088388346, %v564_v62 }
 0x1e0   :  { %v619_v3 = vpack.c.bf16 %v613_v63, %v613_v63  ;;  %v616_v12 = vpack.c.bf16 %v614_v7, %v614_v7 }
 0x1e1   :  { %v557_v5 = vpop.f32.mrf.mxu3 }
 0x1e2   :  { %v648_v8 = vunpack.c.l.b16 %v619_v3  ;;  %v563_v9 = vmul.f32 %v561_v1, %v557_v5  ;;  %v642_v16 = vunpack.c.l.b16 %v616_v12 }
 0x1e4   :  { %v565_v10 = vadd.f32 %v563_v9, %v520_v4  ;;  %v649_v11 = vpack.c.b16 %v648_v8, %v647_v6 }
 0x1e6   :  { %v615_v13 = vmul.f32 0.088388346, %v565_v10  ;;  %v655_v14 = vsel %vm650_vm8, %v649_v11, 0 }
 0x1e7   :  { %664 = vmatpush.bf16.xpose.msrb.mxu3 %v655_v14 }
 0x1e8   :  { %v617_v15 = vpack.c.bf16 %v615_v13, %v615_v13 }
 0x1ea   :  { %v643_v17 = vunpack.c.l.b16 %v617_v15 }
 0x1ec   :  { %v644_v18 = vpack.c.b16 %v643_v17, %v642_v16 }
 0x1ee   :  { %719 = vrot.lane.b32.xlu0 %v644_v18, %s2378_s15  ;;  %1684 = vmatmul.msk.bf16.vlgmr.msrb.gmra.mxu3 %vm650_vm8, %v644_v18 }
 0x1ef   :  { %731 = vmatpush.bf16.xpose.msra.mxu3 %v655_v14 }
 0x1f6   :  { %837 = vrot.lane.b32.xlu0 %v644_v18, %s2368_s25  ;;  %s2379_s25 = smov 32  }
 0x260   :  { %v720_v19 = vpop.permute.xlu0 %719 }
 0x261   :  { %1686 = vmatmul.msk.bf16.vlgmr.msra.gmra.mxu3 %vm650_vm8, %v720_v19 }
 0x268   :  { %v838_v46 = vpop.permute.xlu0 %837 }
 0x271   :  { %v666_v21 = vpop.f32.mrf.mxu3 }
 0x272   :  { %v667_v22 = vadd.f32 %v666_v21, %v2689_v20 }
 0x274   :  { %v672_v23 = vsel %vm671_vm9, %v667_v22, -inf }
 0x275   :  { %673 = vmax.xlane.f32.xlu1 %v672_v23 }
 0x279   :  { %v668_v25 = vpop.f32.mrf.mxu3 }
 0x27a   :  { %v669_v26 = vadd.f32 %v668_v25, %v2693_v24 }
 0x27c   :  { %v675_v27 = vsel %vm671_vm9, %v669_v26, -inf }
 0x27d   :  { %676 = vmax.xlane.f32.xlu1 %v675_v27 }
 0x296   :  { %839 = vrot.lane.b32.xlu1 %v649_v11, %s2378_s15 }
 0x2e4   :  { %v733_v28 = vpop.f32.mrf.mxu3 }
 0x2e5   :  { %v734_v47 = vadd.f32 %v733_v28, %v2689_v20 }
 0x2e7   :  { %v738_v48 = vsel %vm671_vm9, %v734_v47, -inf }
 0x2e8   :  { %v674_v29 = vpop.xlane.xlu1 %673 }
 0x2e9   :  { %v678_v30 = vsub.f32 %v667_v22, %v674_v29 }
 0x2eb   :  { %v680_v32 = vmul.f32 1.442695, %v678_v30 }
 0x2ec   :  { %v735_v33 = vpop.f32.mrf.mxu3 }
 0x2ed   :  { %2033 = vpow2.f32 %v680_v32  ;;  %v736_v34 = vadd.f32 %v735_v33, %v2693_v24 }
 0x2ef   :  { %v741_v35 = vsel %vm671_vm9, %v736_v34, -inf }
 0x2f0   :  { %742 = vmax.xlane.f32.xlu1 %v741_v35  ;;  %v677_v36 = vpop.xlane.xlu1 %676 }
 0x2f1   :  { %v679_v37 = vsub.f32 %v669_v26, %v677_v36 }
 0x2f3   :  { %v2034_v38 = vpop.eup %2033  ;;  %v682_v39 = vmul.f32 1.442695, %v679_v37 }
 0x2f4   :  { %v684_v40 = vsel %vm671_vm9, %v2034_v38, 0.0 }
 0x2f5   :  { %2035 = vpow2.f32 %v682_v39  ;;  %685 = vadd.xlane.f32.xlu2 %v684_v40 }
 0x2fb   :  { %v2036_v41 = vpop.eup %2035 }
 0x2fc   :  { %v687_v42 = vsel %vm671_vm9, %v2036_v41, 0.0 }
 0x2fd   :  { %688 = vadd.xlane.f32.xlu2 %v687_v42 }
 0x308   :  { %v840_v44 = vpop.permute.xlu1 %839 }
 0x309   :  { %v845_v45 = vsel %vm650_vm8, %v840_v44, 0 }
 0x30a   :  { %854 = vmatpush.bf16.xpose.msrb.mxu3 %v845_v45 }
 0x311   :  { %1706 = vmatmul.msk.bf16.vlgmr.msrb.gmra.mxu3 %vm650_vm8, %v838_v46 }
 0x315   :  { %936 = vrot.lane.b32.xlu2 %v644_v18, %s2379_s25 }
 0x33e   :  { %739 = vmax.xlane.f32.xlu2 %v738_v48 }
 0x363   :  { %v743_v58 = vpop.xlane.xlu1 %742 }
 0x364   :  { %v745_v59 = vsub.f32 %v736_v34, %v743_v58 }
 0x366   :  { %v748_v60 = vmul.f32 1.442695, %v745_v59 }
 0x368   :  { %v686_v51 = vpop.xlane.xlu2 %685 }
 0x369   :  { %2037 = vrcp.f32 %v686_v51 }
 0x36f   :  { %v2038_v53 = vpop.eup %2037 }
 0x370   :  { %v689_v52 = vpop.xlane.xlu2 %688  ;;  %v692_v55 = vmul.f32 %v2038_v53, %v2034_v38  ;;  %v1951_v53 = vld [vmem:[#allocation13 + $0x18] sm:$0xff] }
 0x371   :  { %2039 = vrcp.f32 %v689_v52  ;;  %800 = vmatpush.bf16.msrb.mxu1 %v1951_v53  ;;  %v1842_v53 = vld [vmem:[#allocation16 + $0x60] sm:$0xf] }
 0x372   :  { %2041 = vpow2.f32 %v748_v60 }
 0x377   :  { %v2040_v54 = vpop.eup %2039 }
 0x378   :  { %v693_v56 = vmul.f32 %v2040_v54, %v2036_v41  ;;  %v2709_v1 = vpop.eup %2041  ;;  %v937_v12 = vpop.permute.xlu2 %936 }
 0x379   :  { %v753_v3 = vsel %vm671_vm9, %v2709_v1, 0.0 }
 0x37a   :  { %v694_v57 = vpack.c.bf16 %v693_v56, %v692_v55  ;;  %v1950_v55 = vld [vmem:[#allocation13 + $0x10] sm:$0xff] }
 0x37b   :  { %801 = vmatpush.bf16.msrb.mxu1 %v1950_v55 }
 0x37c   :  { %1685 = vmatmul.msk.bf16.vlgmr.msrb.gmra.mxu2 %vm671_vm9, %v694_v57 }
 0x37d   :  { %948 = vmatpush.bf16.xpose.msrb.mxu2 %v845_v45 }
 0x394   :  { %v856_v61 = vpop.f32.mrf.mxu3 }
 0x395   :  { %v857_v62 = vadd.f32 %v856_v61, %v2689_v20 }
 0x397   :  { %v861_v63 = vsel %vm671_vm9, %v857_v62, -inf }
 0x398   :  { %862 = vmax.xlane.f32.xlu1 %v861_v63 }
 0x39c   :  { %v858_v21 = vpop.f32.mrf.mxu3 }
 0x39d   :  { %v859_v23 = vadd.f32 %v858_v21, %v2693_v24 }
 0x39f   :  { %v864_v28 = vsel %vm671_vm9, %v859_v23, -inf }
 0x3a0   :  { %754 = vadd.xlane.f32.xlu1 %v753_v3 }
 0x3b1   :  { %v740_v15 = vpop.xlane.xlu2 %739 }
 0x3b2   :  { %v744_v18 = vsub.f32 %v734_v47, %v740_v15  ;;  %v1955_v15 = vld [vmem:[#allocation13 + $0x38] sm:$0xff] }
 0x3b4   :  { %v746_v22 = vmul.f32 1.442695, %v744_v18 }
 0x3ff   :  { %v713_v4 = vpop.f32.mrf.mxu2 }
 0x407   :  { %v715_v5 = vpop.f32.mrf.mxu2 }
 0x408   :  { %v718_v6 = vpack.c.bf16 %v715_v5, %v713_v4 }
 0x40a   :  { %1705 = vmatmul.msk.bf16.vlgmr.msra.gmra.mxu2 %vm650_vm8, %v718_v6 }
 0x40b   :  { %v863_v7 = vpop.xlane.xlu1 %862 }
 0x40c   :  { %v867_v8 = vsub.f32 %v857_v62, %v863_v7 }
 0x40e   :  { %v869_v9 = vmul.f32 1.442695, %v867_v8 }
 0x410   :  { %2043 = vpow2.f32 %v869_v9 }
 0x411   :  { %2045 = vpow2.f32 %v746_v22 }
 0x413   :  { %v755_v40 = vpop.xlane.xlu1 %754 }
 0x416   :  { %v2714_v10 = vpop.eup %2043 }
 0x417   :  { %v873_v11 = vsel %vm671_vm9, %v2714_v10, 0.0  ;;  %v2046_v29 = vpop.eup %2045 }
 0x418   :  { %874 = vadd.xlane.f32.xlu1 %v873_v11  ;;  %v1953_v11 = vld [vmem:[#allocation13 + $0x28] sm:$0xff] }
 0x419   :  { %926 = vmatpush.bf16.msra.mxu1 %v1953_v11  ;;  %v1965_v11 = vld [vmem:[#allocation14 + $0x44] sm:$0xf0] }
 0x41a   :  { %1717 = vmatmul.msk.bf16.vlgmr.msrb.gmra.mxu2 %vm650_vm8, %v937_v12  ;;  %v1952_v12 = vld [vmem:[#allocation13 + $0x20] sm:$0xff] }
 0x41d   :  { %927 = vmatpush.bf16.msra.mxu1 %v1952_v12  ;;  %v1964_v12 = vld [vmem:[#allocation14 + $0x44] sm:$0xf] }
 0x48b   :  { %v875_v56 = vpop.xlane.xlu1 %874 }
 0x48d   :  { %v2719_v13 = vpop.f32.mrf.mxu2 }
 0x495   :  { %v2721_v14 = vpop.f32.mrf.mxu2 }
 0x49d   :  { %v950_v16 = vpop.f32.mrf.mxu2 }
 0x49e   :  { %v951_v17 = vadd.f32 %v950_v16, %v2689_v20  ;;  %v750_v20 = vsel %vm671_vm9, %v2046_v29, 0.0 }
 0x4a0   :  { %v955_v19 = vsel %vm671_vm9, %v951_v17, -inf }
 0x4a1   :  { %956 = vmax.xlane.f32.xlu0 %v955_v19 }
 0x4a5   :  { %v952_v25 = vpop.f32.mrf.mxu2 }
 0x4a6   :  { %v953_v26 = vadd.f32 %v952_v25, %v2693_v24 }
 0x4a8   :  { %v958_v27 = vsel %vm671_vm9, %v953_v26, -inf }
 0x4a9   :  { %959 = vmax.xlane.f32.xlu2 %v958_v27  ;;  %865 = vmax.xlane.f32.xlu0 %v864_v28 }
 0x4b1   :  { %751 = vadd.xlane.f32.xlu2 %v750_v20 }
 0x514   :  { %v957_v30 = vpop.xlane.xlu0 %956 }
 0x515   :  { %v961_v32 = vsub.f32 %v951_v17, %v957_v30 }
 0x517   :  { %v963_v33 = vmul.f32 1.442695, %v961_v32 }
 0x519   :  { %2047 = vpow2.f32 %v963_v33 }
 0x51c   :  { %v960_v34 = vpop.xlane.xlu2 %959  ;;  %v866_v35 = vpop.xlane.xlu0 %865 }
 0x51d   :  { %v962_v36 = vsub.f32 %v953_v26, %v960_v34  ;;  %v868_v37 = vsub.f32 %v859_v23, %v866_v35 }
 0x51f   :  { %v2048_v24 = vpop.eup %2047  ;;  %v965_v38 = vmul.f32 1.442695, %v962_v36  ;;  %v871_v39 = vmul.f32 1.442695, %v868_v37 }
 0x520   :  { %v967_v41 = vsel %vm671_vm9, %v2048_v24, 0.0 }
 0x521   :  { %2049 = vpow2.f32 %v965_v38  ;;  %968 = vadd.xlane.f32.xlu0 %v967_v41  ;;  %v1786_v38 = vld [vmem:[#allocation14 + $0x70] sm:$0xf]  ;;  %v1788_v41 = vld [vmem:[#allocation14 + $0x78] sm:$0xf0] }
 0x522   :  { %2051 = vpow2.f32 %v871_v39  ;;  %v1970_v39 = vld [vmem:[#allocation14 + $0x74] sm:$0xf] }
 0x523   :  { %2053 = vrcp.f32 %v755_v40 }
 0x524   :  { %v752_v42 = vpop.xlane.xlu2 %751 }
 0x525   :  { %2055 = vrcp.f32 %v752_v42  ;;  %v1987_v42 = vld [vmem:[#allocation16 + $0x74] sm:$0xf0] }
 0x527   :  { %v2050_v44 = vpop.eup %2049 }
 0x528   :  { %v2052_v45 = vpop.eup %2051  ;;  %v970_v46 = vsel %vm671_vm9, %v2050_v44, 0.0 }
 0x529   :  { %v2054_v47 = vpop.eup %2053  ;;  %971 = vadd.xlane.f32.xlu2 %v970_v46  ;;  %v876_v48 = vsel %vm671_vm9, %v2052_v45, 0.0  ;;  %v1986_v46 = vld [vmem:[#allocation16 + $0x74] sm:$0xf] }
 0x52a   :  { %877 = vadd.xlane.f32.xlu0 %v876_v48  ;;  %v759_v50 = vmul.f32 %v2054_v47, %v2709_v1  ;;  %v1852_v47 = vld [vmem:[#allocation16 + $0x78] sm:$0xf0] }
 0x52b   :  { %v2056_v49 = vpop.eup %2055  ;;  %v1855_v48 = vor.u32 %v1986_v46, %v1852_v47  ;;  %v1812_v46 = vld [vmem:[#allocation16 + $0x28] sm:$0xf0] }
 0x52c   :  { %v758_v51 = vmul.f32 %v2056_v49, %v2046_v29  ;;  %v1969_v49 = vld [vmem:[#allocation14 + $0x64] sm:$0xf0] }
 0x52e   :  { %v760_v52 = vpack.c.bf16 %v759_v50, %v758_v51  ;;  %v1968_v50 = vld [vmem:[#allocation14 + $0x64] sm:$0xf] }
 0x530   :  { %1687 = vmatmul.msk.bf16.vlgmr.msra.gmra.mxu0 %vm671_vm9, %v760_v52  ;;  %v1780_v52 = vld [vmem:[#allocation14 + $0x68] sm:$0xf0] }
 0x531   :  { %v1783_v55 = vor.u32 %v1968_v50, %v1780_v52  ;;  %v1802_v52 = vld [vmem:[#allocation16 + $0x10] sm:$0xf] }
 0x541   :  { %884 = vrot.lane.b32.xlu2 %v2674_v43, %s2378_s15 }
 0x594   :  { %v969_v54 = vpop.xlane.xlu0 %968 }
 0x595   :  { %2057 = vrcp.f32 %v969_v54  ;;  %v1985_v54 = vld [vmem:[#allocation16 + $0x64] sm:$0xf0] }
 0x596   :  { %2059 = vrcp.f32 %v875_v56  ;;  %v1843_v56 = vor.u32 %v1985_v54, %v1842_v53  ;;  %v1975_v53 = vld [vmem:[#allocation16 + $0x14] sm:$0xf0] }
 0x59b   :  { %v2058_v59 = vpop.eup %2057 }
 0x59c   :  { %v972_v57 = vpop.xlane.xlu2 %971  ;;  %v2060_v60 = vpop.eup %2059  ;;  %v975_v63 = vmul.f32 %v2058_v59, %v2048_v24 }
 0x59d   :  { %2061 = vrcp.f32 %v972_v57  ;;  %v878_v58 = vpop.xlane.xlu0 %877  ;;  %v881_v43 = vmul.f32 %v2060_v60, %v2714_v10  ;;  %v1954_v10 = vld [vmem:[#allocation13 + $0x30] sm:$0xff]  ;;  %v1984_v57 = vld [vmem:[#allocation16 + $0x64] sm:$0xf] }
 0x59e   :  { %2063 = vrcp.f32 %v878_v58  ;;  %v1844_v58 = vld [vmem:[#allocation16 + $0x68] sm:$0xf0]  ;;  %v1770_v60 = vld [vmem:[#allocation14 + $0x50] sm:$0xf] }
 0x59f   :  { %v1847_v59 = vor.u32 %v1984_v57, %v1844_v58  ;;  %v1804_v57 = vld [vmem:[#allocation16 + $0x18] sm:$0xf0] }
 0x5a3   :  { %v2062_v61 = vpop.eup %2061 }
 0x5a4   :  { %v2064_v62 = vpop.eup %2063  ;;  %v976_v1 = vmul.f32 %v2062_v61, %v2050_v44  ;;  %v885_v3 = vpop.permute.xlu2 %884  ;;  %v1791_v44 = vor.u32 %v1970_v39, %v1788_v41  ;;  %v1967_v61 = vld [vmem:[#allocation14 + $0x54] sm:$0xf0]  ;;  %v1810_v41 = vld [vmem:[#allocation16 + $0x20] sm:$0xf] }
 0x5a5   :  { %v882_v4 = vmul.f32 %v2064_v62, %v2052_v45  ;;  %897 = vmatpush.bf16.msrb.mxu0 %v885_v3  ;;  %988 = vmatpush.bf16.msra.mxu3 %v885_v3  ;;  %v1966_v62 = vld [vmem:[#allocation14 + $0x54] sm:$0xf]  ;;  %v1834_v3 = vld [vmem:[#allocation16 + $0x50] sm:$0xf] }
 0x5a6   :  { %v977_v5 = vpack.c.bf16 %v976_v1, %v975_v63  ;;  %1178 = vmatpush.bf16.msra.mxu2 %v1791_v44  ;;  %v1771_v63 = vor.u32 %v1967_v61, %v1770_v60  ;;  %v1772_v1 = vld [vmem:[#allocation14 + $0x58] sm:$0xf0]  ;;  %v1957_v60 = vld [vmem:[#allocation14 + $0x4] sm:$0xf0]  ;;  %v1956_v61 = vld [vmem:[#allocation14 + $0x4] sm:$0xf] }
 0x5a7   :  { %v883_v6 = vpack.c.bf16 %v882_v4, %v881_v43  ;;  %v1983_v43 = vld [vmem:[#allocation16 + $0x54] sm:$0xf0]  ;;  %v1775_v4 = vor.u32 %v1966_v62, %v1772_v1  ;;  %v1732_v1 = vld [vmem:[#allocation14 + $0x8] sm:$0xf0] }
 0x5a8   :  { %1718 = vmatmul.msk.bf16.vlgmr.msra.gmra.mxu3 %vm671_vm9, %v977_v5  ;;  %v1835_v5 = vor.u32 %v1983_v43, %v1834_v3  ;;  %v1794_v3 = vld [vmem:[#allocation16] sm:$0xf]  ;;  %v1973_v43 = vld [vmem:[#allocation16 + $0x4] sm:$0xf0] }
 0x5a9   :  { %1707 = vmatmul.msk.bf16.vlgmr.msrb.gmra.mxu0 %vm671_vm9, %v883_v6  ;;  %v1982_v6 = vld [vmem:[#allocation16 + $0x54] sm:$0xf] }
 0x5aa   :  { %1017 = vmatpush.bf16.msra.mxu0 %v1955_v15  ;;  %1179 = vmatpush.bf16.msra.mxu2 %v1783_v55  ;;  %v1803_v55 = vor.u32 %v1975_v53, %v1802_v52  ;;  %v1988_v53 = vld [vmem:[#allocation17] sm:$0xff] }
 0x5ad   :  { %v773_v7 = vpop.f32.mrf.mxu0 }
 0x5ae   :  { %1018 = vmatpush.bf16.msra.mxu0 %v1954_v10  ;;  %1180 = vmatpush.bf16.msra.mxu2 %v1775_v4  ;;  %v1764_v10 = vld [vmem:[#allocation14 + $0x48] sm:$0xf0] }
 0x5b2   :  { %1302 = vmatpush.bf16.msrb.mxu0 %v1855_v48  ;;  %v1738_v48 = vld [vmem:[#allocation14 + $0x10] sm:$0xf] }
 0x5b5   :  { %v775_v8 = vpop.f32.mrf.mxu0 }
 0x5b6   :  { %v778_v9 = vpack.c.bf16 %v775_v8, %v773_v7  ;;  %1303 = vmatpush.bf16.msrb.mxu0 %v1847_v59  ;;  %v1836_v7 = vld [vmem:[#allocation16 + $0x58] sm:$0xf0]  ;;  %v1730_v59 = vld [vmem:[#allocation14] sm:$0xf] }
 0x5b7   :  { %v1839_v8 = vor.u32 %v1982_v6, %v1836_v7  ;;  %v1795_v6 = vor.u32 %v1973_v43, %v1794_v3  ;;  %v1972_v7 = vld [vmem:[#allocation16 + $0x4] sm:$0xf] }
 0x5b8   :  { %1696 = vmatmul.msk.bf16.vlgmr.msrb.gmra.mxu1 %vm650_vm8, %v778_v9  ;;  %v1762_v9 = vld [vmem:[#allocation14 + $0x40] sm:$0xf] }
 0x5b9   :  { %v1763_v15 = vor.u32 %v1965_v11, %v1762_v9 }
 0x5ba   :  { %1304 = vmatpush.bf16.msrb.mxu0 %v1839_v8  ;;  %v1796_v8 = vld [vmem:[#allocation16 + $0x8] sm:$0xf0] }
 0x5bb   :  { %v1799_v9 = vor.u32 %v1972_v7, %v1796_v8 }
 0x626   :  { %v899_v16 = vpop.f32.mrf.mxu0 }
 0x62b   :  { %v990_v17 = vpop.f32.mrf.mxu3 }
 0x62e   :  { %v901_v18 = vpop.f32.mrf.mxu0 }
 0x62f   :  { %v904_v19 = vpack.c.bf16 %v901_v18, %v899_v16  ;;  %v1826_v16 = vld [vmem:[#allocation16 + $0x40] sm:$0xf]  ;;  %v1767_v18 = vor.u32 %v1964_v12, %v1764_v10 }
 0x631   :  { %1716 = vmatmul.msk.bf16.vlgmr.msra.gmra.mxu1 %vm650_vm8, %v904_v19  ;;  %1181 = vmatpush.bf16.msra.mxu2 %v1767_v18 }
 0x633   :  { %v992_v21 = vpop.f32.mrf.mxu3 }
 0x634   :  { %v995_v22 = vpack.c.bf16 %v992_v21, %v990_v17  ;;  %v1981_v17 = vld [vmem:[#allocation16 + $0x44] sm:$0xf0]  ;;  %v1980_v21 = vld [vmem:[#allocation16 + $0x44] sm:$0xf] }
 0x635   :  { %v803_v23 = vpop.f32.mrf.mxu1  ;;  %v1827_v19 = vor.u32 %v1981_v17, %v1826_v16 }
 0x636   :  { %1727 = vmatmul.msk.bf16.vlgmr.msra.gmra.mxu0 %vm650_vm8, %v995_v22  ;;  %v833_v27 = vadd.f32 %v2719_v13, %v803_v23  ;;  %v1828_v22 = vld [vmem:[#allocation16 + $0x48] sm:$0xf0] }
 0x637   :  { %v1831_v23 = vor.u32 %v1980_v21, %v1828_v22 }
 0x639   :  { %1305 = vmatpush.bf16.msrb.mxu0 %v1831_v23 }
 0x63d   :  { %v805_v25 = vpop.f32.mrf.mxu1 }
 0x63e   :  { %v835_v33 = vadd.f32 %v2721_v14, %v805_v25  ;;  %v1850_v14 = vld [vmem:[#allocation16 + $0x70] sm:$0xf] }
 0x63f   :  { %v1851_v45 = vor.u32 %v1987_v42, %v1850_v14  ;;  %v1754_v25 = vld [vmem:[#allocation14 + $0x30] sm:$0xf]  ;;  %v1977_v14 = vld [vmem:[#allocation16 + $0x24] sm:$0xf0] }
 0x640   :  { %v1811_v44 = vor.u32 %v1977_v14, %v1810_v41  ;;  %v1992_v41 = vld [vmem:[#allocation17 + $0x20] sm:$0xff]  ;;  %v2001_v14 = vld [vmem:[#allocation17 + $0x68] sm:$0xff] }
 0x641   :  { %1288 = vmatpush.bf16.msrb.mxu3 %v1851_v45  ;;  %v1976_v45 = vld [vmem:[#allocation16 + $0x24] sm:$0xf] }
 0x642   :  { %v1815_v47 = vor.u32 %v1976_v45, %v1812_v46  ;;  %v1990_v46 = vld [vmem:[#allocation17 + $0x10] sm:$0xff] }
 0x645   :  { %1289 = vmatpush.bf16.msrb.mxu3 %v1843_v56  ;;  %v1974_v56 = vld [vmem:[#allocation16 + $0x14] sm:$0xf] }
 0x646   :  { %v1807_v58 = vor.u32 %v1974_v56, %v1804_v57  ;;  %v1997_v57 = vld [vmem:[#allocation17 + $0x48] sm:$0xff] }
 0x649   :  { %1290 = vmatpush.bf16.msrb.mxu3 %v1835_v5  ;;  %v1735_v5 = vor.u32 %v1956_v61, %v1732_v1 }
 0x64d   :  { %1291 = vmatpush.bf16.msrb.mxu3 %v1827_v19 }
 0x6ae   :  { %v929_v26 = vpop.f32.mrf.mxu1 }
 0x6af   :  { %v934_v28 = vadd.f32 %v929_v26, %v833_v27  ;;  %v1963_v26 = vld [vmem:[#allocation14 + $0x34] sm:$0xf0]  ;;  %v1962_v27 = vld [vmem:[#allocation14 + $0x34] sm:$0xf] }
 0x6b3   :  { %v1020_v29 = vpop.f32.mrf.mxu0 }
 0x6b4   :  { %v1025_v20 = vadd.f32 %v1020_v29, %v934_v28  ;;  %v1755_v28 = vor.u32 %v1963_v26, %v1754_v25  ;;  %v1756_v29 = vld [vmem:[#allocation14 + $0x38] sm:$0xf0] }
 0x6b6   :  { %v2745_v30 = vadd.f32 %v1025_v20, %v2549_v0  ;;  %v931_v32 = vpop.f32.mrf.mxu1  ;;  %v1971_v0 = vld [vmem:[#allocation14 + $0x74] sm:$0xf0]  ;;  %v1818_v20 = vld [vmem:[#allocation16 + $0x30] sm:$0xf] }
 0x6b7   :  { %v935_v35 = vadd.f32 %v931_v32, %v835_v33  ;;  %v1787_v40 = vor.u32 %v1971_v0, %v1786_v38  ;;  %v1979_v32 = vld [vmem:[#allocation16 + $0x34] sm:$0xf0]  ;;  %v1759_v33 = vor.u32 %v1962_v27, %v1756_v29  ;;  %v1961_v38 = vld [vmem:[#allocation14 + $0x24] sm:$0xf0]  ;;  %v1960_v0 = vld [vmem:[#allocation14 + $0x24] sm:$0xf] }
 0x6b8   :  { %v1029_v34 = vmul.f32 %v2745_v30, %v2745_v30 }
 0x6b9   :  { %1164 = vmatpush.bf16.msrb.mxu1 %v1787_v40  ;;  %1182 = vmatpush.bf16.msra.mxu2 %v1759_v33  ;;  %v1748_v40 = vld [vmem:[#allocation14 + $0x28] sm:$0xf0] }
 0x6ba   :  { %1031 = vadd.xlane.f32.xlu1 %v1029_v34  ;;  %v1819_v34 = vor.u32 %v1979_v32, %v1818_v20  ;;  %v1751_v42 = vor.u32 %v1960_v0, %v1748_v40  ;;  %v2026_v32 = vld [vmem:[%s2820_s16] ss:$0 sm:$0xff]  ;;  %v2003_v0 = vld [vmem:[#allocation17 + $0x78] sm:$0xff]  ;;  %v2002_v40 = vld [vmem:[#allocation17 + $0x70] sm:$0xff]  ;;  %s2380_s16 = smov [#allocation19]  }
 0x6bb   :  { %v1022_v36 = vpop.f32.mrf.mxu0  ;;  %s1566_s22 = sshll.u32 %s2380_s16, 4  ;;  %s1567_s22 = int_to_ptr.vmem [resolvable:$true] %s1566_s22 }
 0x6bc   :  { %v1026_v37 = vadd.f32 %v1022_v36, %v935_v35  ;;  %v1978_v35 = vld [vmem:[#allocation16 + $0x34] sm:$0xf]  ;;  %v1820_v36 = vld [vmem:[#allocation16 + $0x38] sm:$0xf0]  ;;  %1292 = vmatpush.bf16.msrb.mxu3 %v1819_v34 }
 0x6bd   :  { %1183 = vmatpush.bf16.msra.mxu2 %v1751_v42  ;;  %v1991_v42 = vld [vmem:[#allocation17 + $0x18] sm:$0xff] }
 0x6be   :  { %v2751_v24 = vadd.f32 %v1026_v37, %v2556_v2  ;;  %v1778_v2 = vld [vmem:[#allocation14 + $0x60] sm:$0xf]  ;;  %v1823_v37 = vor.u32 %v1978_v35, %v1820_v36 }
 0x6bf   :  { %v1779_v51 = vor.u32 %v1969_v49, %v1778_v2  ;;  %v1959_v2 = vld [vmem:[#allocation14 + $0x14] sm:$0xf0]  ;;  %v1958_v49 = vld [vmem:[#allocation14 + $0x14] sm:$0xf] }
 0x6c0   :  { %v1030_v13 = vmul.f32 %v2751_v24, %v2751_v24  ;;  %1306 = vmatpush.bf16.msrb.mxu0 %v1823_v37  ;;  %1293 = vmatpush.bf16.msrb.mxu3 %v1811_v44  ;;  %v1739_v50 = vor.u32 %v1959_v2, %v1738_v48  ;;  %v2000_v44 = vld [vmem:[#allocation17 + $0x60] sm:$0xff]  ;;  %v1999_v48 = vld [vmem:[#allocation17 + $0x58] sm:$0xff]  ;;  %v1989_v2 = vld [vmem:[#allocation17 + $0x8] sm:$0xff] }
 0x6c1   :  { %1165 = vmatpush.bf16.msrb.mxu1 %v1779_v51  ;;  %v1740_v51 = vld [vmem:[#allocation14 + $0x18] sm:$0xf0] }
 0x6c2   :  { %1033 = vadd.xlane.f32.xlu0 %v1030_v13  ;;  %v1746_v13 = vld [vmem:[#allocation14 + $0x20] sm:$0xf]  ;;  %v1743_v54 = vor.u32 %v1958_v49, %v1740_v51 }
 0x6c3   :  { %v1747_v39 = vor.u32 %v1961_v38, %v1746_v13  ;;  %v1995_v13 = vld [vmem:[#allocation17 + $0x38] sm:$0xff]  ;;  %v1994_v38 = vld [vmem:[#allocation17 + $0x30] sm:$0xff] }
 0x6c4   :  { %1307 = vmatpush.bf16.msrb.mxu0 %v1815_v47  ;;  %1184 = vmatpush.bf16.msra.mxu2 %v1743_v54 }
 0x6c5   :  { %1166 = vmatpush.bf16.msrb.mxu1 %v1771_v63  ;;  %1294 = vmatpush.bf16.msrb.mxu3 %v1803_v55  ;;  %v1731_v63 = vor.u32 %v1957_v60, %v1730_v59  ;;  %v1996_v59 = vld [vmem:[#allocation17 + $0x40] sm:$0xff] }
 0x6c8   :  { %1308 = vmatpush.bf16.msrb.mxu0 %v1807_v58  ;;  %1185 = vmatpush.bf16.msra.mxu2 %v1735_v5 }
 0x6c9   :  { %1167 = vmatpush.bf16.msrb.mxu1 %v1763_v15  ;;  %1295 = vmatpush.bf16.msrb.mxu3 %v1795_v6 }
 0x6cc   :  { %1309 = vmatpush.bf16.msrb.mxu0 %v1799_v9  ;;  %1544 = vmatpush.bf16.msrb.mxu2 %v2003_v0 }
 0x6cd   :  { %1168 = vmatpush.bf16.msrb.mxu1 %v1755_v28 }
 0x6d0   :  { %1545 = vmatpush.bf16.msrb.mxu2 %v2002_v40 }
 0x6d1   :  { %1169 = vmatpush.bf16.msrb.mxu1 %v1747_v39  ;;  %v1993_v39 = vld [vmem:[#allocation17 + $0x28] sm:$0xff] }
 0x6d4   :  { %1546 = vmatpush.bf16.msrb.mxu2 %v2001_v14 }
 0x6d5   :  { %1170 = vmatpush.bf16.msrb.mxu1 %v1739_v50  ;;  %v1998_v50 = vld [vmem:[#allocation17 + $0x50] sm:$0xff] }
 0x6d8   :  { %1547 = vmatpush.bf16.msrb.mxu2 %v2000_v44 }
 0x6d9   :  { %1171 = vmatpush.bf16.msrb.mxu1 %v1731_v63 }
 0x6dc   :  { %1548 = vmatpush.bf16.msrb.mxu2 %v1999_v48 }
 0x6dd   :  { %1530 = vmatpush.bf16.msra.mxu1 %v1995_v13 }
 0x6e0   :  { %1549 = vmatpush.bf16.msrb.mxu2 %v1998_v50 }
 0x6e1   :  { %1531 = vmatpush.bf16.msra.mxu1 %v1994_v38 }
 0x6e4   :  { %1550 = vmatpush.bf16.msrb.mxu2 %v1997_v57 }
 0x6e5   :  { %1532 = vmatpush.bf16.msra.mxu1 %v1993_v39 }
 0x6e8   :  { %1551 = vmatpush.bf16.msrb.mxu2 %v1996_v59 }
 0x6e9   :  { %1533 = vmatpush.bf16.msra.mxu1 %v1992_v41 }
 0x6ed   :  { %1534 = vmatpush.bf16.msra.mxu1 %v1991_v42 }
 0x6f1   :  { %1535 = vmatpush.bf16.msra.mxu1 %v1990_v46 }
 0x6f5   :  { %1536 = vmatpush.bf16.msra.mxu1 %v1989_v2 }
 0x6f9   :  { %1537 = vmatpush.bf16.msra.mxu1 %v1988_v53 }
 0x72d   :  { %v1032_v62 = vpop.xlane.xlu1 %1031 }
 0x72e   :  { %v1035_v4 = vmul.f32 %v1032_v62, %v2602_v31 }
 0x730   :  { %v1037_v11 = vadd.f32 1e-06, %v1035_v4 }
 0x732   :  { %2065 = vrsqrt.f32 %v1037_v11  ;;  %vm1045_vm11 = vweird.f32 %v1037_v11 }
 0x735   :  { %v1034_v12 = vpop.xlane.xlu0 %1033 }
 0x736   :  { %v1036_v15 = vmul.f32 %v1034_v12, %v2602_v31 }
 0x738   :  { %v2066_v10 = vpop.eup %2065  ;;  %v1038_v16 = vadd.f32 1e-06, %v1036_v15 }
 0x739   :  { %v1040_v17 = vmul.f32 %v2066_v10, %v1037_v11  ;;  %vm1046_vm10 = vweird.f32 %v2066_v10 }
 0x73a   :  { %2067 = vrsqrt.f32 %v1038_v16  ;;  %vm1047_vm12 = vmor %vm1045_vm11, %vm1046_vm10  ;;  %vm1055_vm14 = vweird.f32 %v1038_v16 }
 0x73b   :  { %v1041_v18 = vmul.f32 %v2066_v10, %v1040_v17 }
 0x73d   :  { %v1042_v19 = vmul.f32 0.5, %v1041_v18 }
 0x73f   :  { %v1043_v21 = vsub.f32 1.5, %v1042_v19 }
 0x740   :  { %v2068_v22 = vpop.eup %2067 }
 0x741   :  { %v1050_v23 = vmul.f32 %v2068_v22, %v1038_v16  ;;  %v1044_v25 = vmul.f32 %v2066_v10, %v1043_v21  ;;  %vm1056_vm13 = vweird.f32 %v2068_v22 }
 0x742   :  { %vm1057_vm15 = vmor %vm1055_vm14, %vm1056_vm13 }
 0x743   :  { %v1051_v26 = vmul.f32 %v2068_v22, %v1050_v23  ;;  %v1048_v28 = vsel %vm1047_vm12, %v2066_v10, %v1044_v25 }
 0x744   :  { %v1059_v31 = vmul.f32 %v1048_v28, %v2745_v30 }
 0x745   :  { %v1052_v27 = vmul.f32 0.5, %v1051_v26 }
 0x746   :  { %v1065_v35 = vmul.f32 %v2026_v32, %v1059_v31 }
 0x747   :  { %v1053_v29 = vsub.f32 1.5, %v1052_v27 }
 0x749   :  { %v1054_v20 = vmul.f32 %v2068_v22, %v1053_v29 }
 0x74b   :  { %v1058_v33 = vsel %vm1057_vm15, %v2068_v22, %v1054_v20 }
 0x74c   :  { %v1060_v34 = vmul.f32 %v1058_v33, %v2751_v24 }
 0x74e   :  { %v1066_v36 = vmul.f32 %v2026_v32, %v1060_v34 }
 0x750   :  { %v1067_v37 = vpack.c.bf16 %v1066_v36, %v1065_v35 }
 0x752   :  { %1172 = vmatmul.bf16.vlgmr.msrb.gmra.mxu1 %v1067_v37  ;;  %1186 = vmatmul.bf16.vlgmr.msra.gmra.mxu2 %v1067_v37 }
 0x753   :  { %1296 = vmatmul.bf16.vlgmr.msrb.gmra.mxu3 %v1067_v37  ;;  %1310 = vmatmul.bf16.vlgmr.msrb.gmra.mxu0 %v1067_v37 }
 0x7cf   :  { %v2762_v45 = vpop.f32.mrf.mxu1 }
 0x7d0   :  { %v1856_v47 = vmul.f32 -1.442695, %v2762_v45  ;;  %v1311_v35 = vpop.f32.mrf.mxu0 }
 0x7d2   :  { %2069 = vpow2.f32 %v1856_v47 }
 0x7d5   :  { %v2765_v49 = vpop.f32.mrf.mxu2 }
 0x7d6   :  { %v1857_v51 = vmul.f32 -1.442695, %v2765_v49  ;;  %v1297_v21 = vpop.f32.mrf.mxu3 }
 0x7d7   :  { %v2768_v52 = vpop.f32.mrf.mxu1 }
 0x7d8   :  { %v2070_v54 = vpop.eup %2069  ;;  %2071 = vpow2.f32 %v1857_v51  ;;  %v1858_v55 = vmul.f32 -1.442695, %v2768_v52 }
 0x7d9   :  { %v1328_v56 = vadd.f32 1.0, %v2070_v54 }
 0x7da   :  { %2073 = vpow2.f32 %v1858_v55 }
 0x7db   :  { %2075 = vrcp.f32 %v1328_v56  ;;  %v1343_v12 = vand.u32 2147483648, %v1328_v56  ;;  %vm1337_vm1 = vweird.f32 %v1328_v56  ;;  %v1341_v16 = vand.u32 2147483647, %v1328_v56 }
 0x7dd   :  { %v2771_v58 = vpop.f32.mrf.mxu2  ;;  %v1344_v23 = vor.u32 1.1754944e-38, %v1343_v12  ;;  %vm1342_vm4 = vcmp.eq.f32.partialorder %v1341_v16, 8.507059e+37 }
 0x7de   :  { %v2072_v60 = vpop.eup %2071  ;;  %v1859_v61 = vmul.f32 -1.442695, %v2771_v58  ;;  %v1299_v51 = vpop.f32.mrf.mxu3 }
 0x7df   :  { %v1329_v62 = vadd.f32 1.0, %v2072_v60 }
 0x7e0   :  { %v2074_v63 = vpop.eup %2073  ;;  %2077 = vpow2.f32 %v1859_v61  ;;  %v1313_v61 = vpop.f32.mrf.mxu0 }
 0x7e1   :  { %v2076_v1 = vpop.eup %2075  ;;  %2079 = vrcp.f32 %v1329_v62  ;;  %v1330_v43 = vadd.f32 1.0, %v2074_v63  ;;  %v1356_v25 = vand.u32 2147483647, %v1329_v62  ;;  %v1358_v28 = vand.u32 2147483648, %v1329_v62 }
 0x7e2   :  { %v1333_v3 = vmul.f32 %v2076_v1, %v1328_v56  ;;  %vm1338_vm0 = vweird.f32 %v2076_v1  ;;  %vm1352_vm6 = vweird.f32 %v1329_v62 }
 0x7e3   :  { %2081 = vrcp.f32 %v1330_v43  ;;  %vm2774_vm2 = vmor %vm1337_vm1, %vm1338_vm0  ;;  %v1373_v29 = vand.u32 2147483648, %v1330_v43  ;;  %v1371_v32 = vand.u32 2147483647, %v1330_v43  ;;  %vm2784_vm8 = vcmp.eq.f32.partialorder %v1356_v25, 8.507059e+37 }
 0x7e4   :  { %v1334_v4 = vsub.f32 1.0, %v1333_v3  ;;  %vm1367_vm9 = vweird.f32 %v1330_v43  ;;  %v1359_v0 = vor.u32 1.1754944e-38, %v1358_v28 }
 0x7e5   :  { %v1374_v39 = vor.u32 1.1754944e-38, %v1373_v29  ;;  %vm1372_vm11 = vcmp.eq.f32.partialorder %v1371_v32, 8.507059e+37 }
 0x7e6   :  { %v2078_v5 = vpop.eup %2077  ;;  %v1335_v6 = vmul.f32 %v2076_v1, %v1334_v4 }
 0x7e7   :  { %v2080_v7 = vpop.eup %2079  ;;  %v1331_v8 = vadd.f32 1.0, %v2078_v5 }
 0x7e8   :  { %v1348_v9 = vmul.f32 %v2080_v7, %v1329_v62  ;;  %v1336_v11 = vadd.f32 %v2076_v1, %v1335_v6  ;;  %vm1353_vm3 = vweird.f32 %v2080_v7 }
 0x7e9   :  { %2083 = vrcp.f32 %v1331_v8  ;;  %v2082_v15 = vpop.eup %2081  ;;  %vm2780_vm7 = vmor %vm1352_vm6, %vm1353_vm3  ;;  %v1388_v42 = vand.u32 2147483648, %v1331_v8  ;;  %v1386_v47 = vand.u32 2147483647, %v1331_v8  ;;  %vm1382_vm13 = vweird.f32 %v1331_v8 }
 0x7ea   :  { %v1349_v10 = vsub.f32 1.0, %v1348_v9  ;;  %v1363_v17 = vmul.f32 %v2082_v15, %v1330_v43  ;;  %v1340_v22 = vsel %vm2774_vm2, %v2076_v1, %v1336_v11  ;;  %vm1368_vm5 = vweird.f32 %v2082_v15 }
 0x7eb   :  { %v1345_v33 = vsel %vm1342_vm4, %v1344_v23, %v1340_v22  ;;  %vm1369_vm10 = vmor %vm1367_vm9, %vm1368_vm5  ;;  %v1389_v54 = vor.u32 1.1754944e-38, %v1388_v42  ;;  %vm1387_vm15 = vcmp.eq.f32.partialorder %v1386_v47, 8.507059e+37 }
 0x7ec   :  { %v1350_v19 = vmul.f32 %v2080_v7, %v1349_v10  ;;  %v1364_v26 = vsub.f32 1.0, %v1363_v17  ;;  %v1392_v41 = vmul.f32 %v1345_v33, %v2762_v45 }
 0x7ee   :  { %v1351_v27 = vadd.f32 %v2080_v7, %v1350_v19  ;;  %v1365_v31 = vmul.f32 %v2082_v15, %v1364_v26  ;;  %v1396_v53 = vmul.f32 %v1392_v41, %v1297_v21 }
 0x7ef   :  { %v2084_v20 = vpop.eup %2083 }
 0x7f0   :  { %v1378_v34 = vmul.f32 %v2084_v20, %v1331_v8  ;;  %v1366_v13 = vadd.f32 %v2082_v15, %v1365_v31  ;;  %v1355_v38 = vsel %vm2780_vm7, %v2080_v7, %v1351_v27  ;;  %vm1383_vm12 = vweird.f32 %v2084_v20 }
 0x7f1   :  { %v1360_v48 = vsel %vm2784_vm8, %v1359_v0, %v1355_v38  ;;  %vm1384_vm14 = vmor %vm1382_vm13, %vm1383_vm12 }
 0x7f2   :  { %v1379_v40 = vsub.f32 1.0, %v1378_v34  ;;  %v1370_v14 = vsel %vm1369_vm10, %v2082_v15, %v1366_v13  ;;  %v1393_v45 = vmul.f32 %v1360_v48, %v2765_v49 }
 0x7f3   :  { %v1375_v44 = vsel %vm1372_vm11, %v1374_v39, %v1370_v14 }
 0x7f4   :  { %v1380_v46 = vmul.f32 %v2084_v20, %v1379_v40  ;;  %v1394_v2 = vmul.f32 %v1375_v44, %v2768_v52  ;;  %v1397_v62 = vmul.f32 %v1393_v45, %v1311_v35 }
 0x7f6   :  { %v1381_v50 = vadd.f32 %v2084_v20, %v1380_v46  ;;  %v1398_v55 = vmul.f32 %v1394_v2, %v1299_v51 }
 0x7f8   :  { %v1385_v56 = vsel %vm1384_vm14, %v2084_v20, %v1381_v50  ;;  %v1400_v59 = vpack.c.bf16 %v1398_v55, %v1396_v53 }
 0x7f9   :  { %v1390_v57 = vsel %vm1387_vm15, %v1389_v54, %v1385_v56 }
 0x7fa   :  { %v1395_v60 = vmul.f32 %v1390_v57, %v2771_v58  ;;  %1538 = vmatmul.bf16.vlgmr.msra.gmra.mxu1 %v1400_v59 }
 0x7fc   :  { %v1399_v63 = vmul.f32 %v1395_v60, %v1313_v61 }
 0x7fe   :  { %v1401_v52 = vpack.c.bf16 %v1399_v63, %v1397_v62 }
 0x800   :  { %1552 = vmatmul.bf16.vlgmr.msrb.gmra.mxu2 %v1401_v52 }
 0x877   :  { %v1539_v1 = vpop.f32.mrf.mxu1 }
 0x87f   :  { %v1541_v5 = vpop.f32.mrf.mxu1 }
 0x883   :  { %v1553_v3 = vpop.f32.mrf.mxu2 }
 0x884   :  { %v1554_v43 = vadd.f32 %v1553_v3, %v1539_v1 }
 0x886   :  { %v1558_v4 = vadd.f32 %v1554_v43, %v2745_v30 }
 0x888   :  { %1560 = vst [vmem:[#allocation19] sm:$0xff] %v1558_v4 }
 0x88b   :  { %v1555_v49 = vpop.f32.mrf.mxu2 }
 0x88c   :  { %v1556_v58 = vadd.f32 %v1555_v49, %v1541_v5 }
 0x88e   :  { %v1559_v6 = vadd.f32 %v1556_v58, %v2751_v24 }
 0x890   :  { %1561 = vst [vmem:[#allocation19 + $0x8] sm:$0xff] %v1559_v6 }
 0x891   :  { %1574 = dma.vmem_to_hbm [thread:$0]  %s1567_s22, 256, %s1569_s19, [#allocation4], %s2364_s28, %s2364_s28, %s2365_s4  }
 0x892   :  { %2361 = dma.done.wait [#allocation4], 256  }
 0x893   :  { %2362 = vsyncadd [#allocation4], 4294967040 }
 0x894   :  { %1579 = vsyncpa [#allocation3], 1 }
 0x895   :  { %1580 = vsyncpa [#allocation6], 1 }
 0x896   :  { %1581 = vsyncpa [#allocation9], 1 }
 0x897   :  { %1582 = vsyncpa [#allocation12], 1 }
 0x898   :  { %1583 = vsyncpa [#allocation15], 1 }
 0x899   :  { %1584 = vsyncpa [#allocation18], 1 }
 0x89a   :  { %1585 = vsyncpa [#allocation4], 1 }

</bundles_post_ra>
